<compile_context>
chip_gen: v5e
topology: v5e:2x2
jax: 0.10.0
libtpu: 0.0.40
codegen_flags: <defaults>
</compile_context>

<pallas_src>
import jax
import jax.numpy as jnp
from jax.experimental import pallas as pl
from jax.experimental.pallas import tpu as pltpu


def linear_kernel(x_ref, wt_ref, o_ref):
    # One MXU matmul per N-tile: bf16 [B, K] @ bf16 [K, TN] -> f32 [B, TN].
    o_ref[...] = jnp.dot(
        x_ref[...], wt_ref[...], preferred_element_type=jnp.float32
    ).astype(o_ref.dtype)


def num_weight_tiles():
    """2 tiles (one per TensorCore) on v7x-like chips, else 1."""
    try:
        kind = jax.devices()[0].device_kind.lower()
    except Exception:
        return 1
    if "v7" in kind and hasattr(pltpu, "CORE_PARALLEL"):
        return 2
    return 1


def prepare_weight(weight, n_tiles=1, lane_multiple=128):
    """One-time (init) prep of the PyTorch [N, K] weight.

    Returns a bf16, transposed, lane-padded, tile-contiguous array of shape
    [n_tiles, K, TN] (TN = N_pad // n_tiles).  Done once per parameter set,
    NOT per forward call, so the per-call HBM traffic is just a single linear
    bf16 weight stream inside the kernel.
    """
    N, K = weight.shape
    pad_to = lane_multiple * n_tiles
    n_pad = ((N + pad_to - 1) // pad_to) * pad_to
    wt = weight.T.astype(jnp.bfloat16)  # [K, N], bf16 (halves HBM bytes)
    if n_pad != N:
        wt = jnp.pad(wt, ((0, 0), (0, n_pad - N)))  # zero-padded tail classes
    tn = n_pad // n_tiles
    # [K, n_pad] -> [n_tiles, K, TN]: each tile's weights are contiguous in HBM.
    blocked = wt.reshape(K, n_tiles, tn).transpose(1, 0, 2)
    return blocked


def my_linear(x, w_blocked, num_classes):
    """x: [B, K] f32, w_blocked: [n_tiles, K, TN] bf16 (from prepare_weight)."""
    B, K = x.shape
    n_tiles, K2, TN = w_blocked.shape
    assert K == K2, "input_dim mismatch"
    assert TN % 128 == 0, "prepared weight must be lane-padded"
    n_pad = n_tiles * TN

    # Cast x outside the kernel (cheap, 8 KiB) so the MXU gets bf16 operands;
    # accumulation stays f32 via preferred_element_type in the kernel.
    x_bf16 = x.astype(jnp.bfloat16)

    bf16_bytes = jnp.dtype(jnp.bfloat16).itemsize
    f32_bytes = jnp.dtype(jnp.float32).itemsize
    cost = pl.CostEstimate(
        flops=2 * B * K * n_pad,
        bytes_accessed=(B * K + K * n_pad) * bf16_bytes + B * n_pad * f32_bytes,
        transcendentals=0,
    )

    def run(semantics):
        return pl.pallas_call(
            linear_kernel,
            out_shape=jax.ShapeDtypeStruct((B, n_pad), jnp.float32),
            grid=(n_tiles,),
            in_specs=[
                # x is resident across all N-tiles (constant index_map).
                pl.BlockSpec((B, K), lambda j: (0, 0)),
                # One tile-contiguous bf16 weight slab per grid step.
                pl.BlockSpec((None, K, TN), lambda j: (j, 0, 0)),
            ],
            out_specs=pl.BlockSpec((B, TN), lambda j: (0, j)),
            compiler_params=pltpu.CompilerParams(
                dimension_semantics=semantics,
            ),
            cost_estimate=cost,
        )(x_bf16, w_blocked)

    if n_tiles == 1:
        # Single TensorCore (v5e/v6e) or fallback: one step, one contiguous DMA.
        out_padded = run(("arbitrary",))
    else:
        # v7x: split the weight stream across the two TensorCores.
        try:
            out_padded = run((pltpu.CORE_PARALLEL,))
        except Exception:
            out_padded = run(("parallel",))

    # Drop the zero-padded tail classes (tiny B x N_pad slice).
    return out_padded[:, :num_classes]


if __name__ == "__main__":
    # Shapes implied by the module: input_dim=512, num_classes=1000; small batch.
    batch, input_dim, num_classes = 8, 512, 1000

    key = jax.random.PRNGKey(0)
    kx, kw = jax.random.split(key)
    x = jax.random.normal(kx, (batch, input_dim), dtype=jnp.float32)
    # PyTorch nn.Linear weight layout: [num_classes, input_dim].
    weight = jax.random.normal(kw, (num_classes, input_dim), dtype=jnp.float32) * 0.02

    # Init-time prep (transpose + pad + bf16 cast + tile-block, once); the hot
    # path is my_linear().
    n_tiles = num_weight_tiles()
    w_blocked = prepare_weight(weight, n_tiles=n_tiles)
    jax.block_until_ready(w_blocked)

    out = my_linear(x, w_blocked, num_classes)
    jax.block_until_ready(out)

    assert out.shape == (batch, num_classes)

    # Reference: what the kernel mathematically computes — f32 matmul on
    # bf16-quantized operands (MXU accumulates in f32).
    x_q = x.astype(jnp.bfloat16).astype(jnp.float32)
    w_q = weight.astype(jnp.bfloat16).astype(jnp.float32)
    ref = x_q @ w_q.T
    assert jnp.allclose(out, ref, atol=1e-2, rtol=1e-2)

    # Loose sanity check against the full-f32 PyTorch-equivalent forward.
    ref_f32 = x @ weight.T
    assert jnp.allclose(out, ref_f32, atol=1e-1, rtol=1e-1)

    print("KERNEL_OK")
</pallas_src>

<mosaic_0001>
module attributes {stable_mosaic.version = 11 : i64} {
  func.func @linear_kernel(%arg0: i32, %arg1: memref<8x512xbf16, #tpu.memory_space<vmem>>, %arg2: memref<1x512x1024xbf16, #tpu.memory_space<vmem>>, %arg3: memref<8x1024xf32, #tpu.memory_space<vmem>>) attributes {dimension_semantics = [#tpu.dimension_semantics<arbitrary>], iteration_bounds = array<i64: 1>, scalar_prefetch = 0 : i64, scratch_operands = 0 : i64, tpu.core_type = #tpu.core_type<tc>, window_params = [{pipeline_mode = #tpu.pipeline_mode<synchronous>, transform_indices = @transform_0, window_bounds = array<i64: 8, 512>}, {transform_indices = @transform_1, window_bounds = array<i64: 1, 512, 1024>}, {transform_indices = @transform_2, window_bounds = array<i64: 8, 1024>}]} {
    %c0 = arith.constant 0 : index
    %c0_0 = arith.constant 0 : index
    %0 = vector.load %arg1[%c0, %c0_0] : memref<8x512xbf16, #tpu.memory_space<vmem>>, vector<8x512xbf16>
    %c0_1 = arith.constant 0 : index
    %c0_2 = arith.constant 0 : index
    %c0_3 = arith.constant 0 : index
    %1 = vector.load %arg2[%c0_1, %c0_2, %c0_3] : memref<1x512x1024xbf16, #tpu.memory_space<vmem>>, vector<1x512x1024xbf16>
    %2 = vector.shape_cast %1 : vector<1x512x1024xbf16> to vector<512x1024xbf16>
    %cst = arith.constant dense<0.000000e+00> : vector<8x1024xf32>
    %3 = tpu.matmul %0, %2, %cst {dimension_numbers = #tpu.dot_dimension_numbers<[1], [0], [0], [1], [0, 0, 1, 1], [], []>} : vector<8x512xbf16>, vector<512x1024xbf16>, vector<8x1024xf32> -> vector<8x1024xf32>
    %c0_4 = arith.constant 0 : index
    %c0_5 = arith.constant 0 : index
    %4 = vector.load %arg3[%c0_4, %c0_5] : memref<8x1024xf32, #tpu.memory_space<vmem>>, vector<8x1024xf32>
    tpu.vector_store %arg3[%c0_4, %c0_5], %3 {strides = array<i32>} : memref<8x1024xf32, #tpu.memory_space<vmem>>, vector<8x1024xf32>,
    return
  }
  func.func @transform_0(%arg0: i32) -> (i32, i32) {
    %c0_i32 = arith.constant 0 : i32
    %c0_i32_0 = arith.constant 0 : i32
    %c0_i32_1 = arith.constant 0 : i32
    return %c0_i32, %c0_i32_0 : i32, i32
  }
  func.func @transform_1(%arg0: i32) -> (i32, i32, i32) {
    %c0_i32 = arith.constant 0 : i32
    %c0_i32_0 = arith.constant 0 : i32
    %c0_i32_1 = arith.constant 0 : i32
    return %arg0, %c0_i32, %c0_i32_0 : i32, i32, i32
  }
  func.func @transform_2(%arg0: i32) -> (i32, i32) {
    %c0_i32 = arith.constant 0 : i32
    %c0_i32_0 = arith.constant 0 : i32
    return %c0_i32, %arg0 : i32, i32
  }
}

</mosaic_0001>

<bundles_post_ra>
// kernel: tpu_custom_call.1
= control target key start
LH: loop header
LB: loop body
LE: loop exit
PB: predicated region body
PF: predicated region fallthrough
CT: control target
= control target key end

     0   :  { %7 = vsyncpa [#allocation3], 0  ;;  %s3468_s0 = inlined_call_operand.hbm [shape: bf16[8,512], index: 0, kind: input, shape index: {}]   ;;  %s3469_s1 = inlined_call_operand.hbm [shape: bf16[1,512,1024], index: 1, kind: input, shape index: {}]   ;;  %s3470_s2 = inlined_call_operand.hbm [shape: f32[8,1024], index: 2, kind: output, shape index: {}]  }
   0x1   :  { %8 = vsyncpa [#allocation6], 0 }
   0x2   :  { %9 = vsyncpa [#allocation4], 0  ;;  %s15_s11 = sshll.u32 %s3468_s0, 4  ;;  %s3399_s12 = smov [#allocation2]   ;;  %s16_s11 = int_to_ptr.hbm [resolvable:$true] %s15_s11 }
   0x3   :  { %s17_s13 = sshll.u32 %s3399_s12, 4  ;;  %s25_s16 = sshll.u32 %s3469_s1, 4  ;;  %s18_s13 = int_to_ptr.vmem [resolvable:$true] %s17_s13  ;;  %s26_s16 = int_to_ptr.hbm [resolvable:$true] %s25_s16 }
   0x4   :  { %20 = dma.hbm_to_vmem [thread:$0]  %s16_s11, 256, %s18_s13, [#allocation3]  }
   0x5   :  { %s3400_s17 = smov [#allocation5]   ;;  %s3401_s19 = smov 512  }
   0x6   :  { %s27_s18 = sshll.u32 %s3400_s17, 4  ;;  %s3402_s20 = smov 32   ;;  %s28_s18 = int_to_ptr.vmem [resolvable:$true] %s27_s18 }
   0x7   :  { %33 = dma.hbm_to_vmem [thread:$0]  %s26_s16, 32768, %s28_s18, [#allocation6], %s3401_s19, %s3401_s19, %s3402_s20  }
   0x8   :  { %3393 = dma.done.wait [#allocation3], 256  }
   0x9   :  { %3394 = vsyncadd [#allocation3], 4294967040 }
   0xa   :  { %3395 = dma.done.wait [#allocation6], 32768  }
   0xb   :  { %3396 = vsyncadd [#allocation6], 4294934528  ;;  %v2262_v0 = vld [vmem:[#allocation5 + $0x1c0] sm:$0xf]  ;;  %s3403_s0 = smov [#allocation7]   ;;  %s2025_s23 = sshll.u32 %s3470_s2, 4  ;;  %s2026_s23 = int_to_ptr.hbm [resolvable:$true] %s2025_s23 }
   0xc   :  { %v3120_v1 = vld [vmem:[#allocation5 + $0x1dc] sm:$0xf0]  ;;  %s2023_s1 = sshll.u32 %s3403_s0, 4  ;;  %s2024_s1 = int_to_ptr.vmem [resolvable:$true] %s2023_s1 }
   0xd   :  { %v2518_v2 = vld [vmem:[#allocation5 + $0x3c0] sm:$0xf]  ;;  %v2263_v3 = vor.u32 %v3120_v1, %v2262_v0 }
   0xe   :  { %v3184_v4 = vld [vmem:[#allocation5 + $0x3dc] sm:$0xf0] }
   0xf   :  { %v2774_v5 = vld [vmem:[#allocation5 + $0x5c0] sm:$0xf]  ;;  %v2519_v7 = vor.u32 %v3184_v4, %v2518_v2  ;;  %1594 = vmatpush.bf16.msra.mxu0 %v2263_v3 }
  0x10   :  { %v3248_v6 = vld [vmem:[#allocation5 + $0x5dc] sm:$0xf0] }
  0x11   :  { %v2775_v8 = vor.u32 %v3248_v6, %v2774_v5  ;;  %v3030_v9 = vld [vmem:[#allocation5 + $0x7c0] sm:$0xf]  ;;  %1607 = vmatpush.bf16.msra.mxu1 %v2519_v7 }
  0x12   :  { %v3312_v10 = vld [vmem:[#allocation5 + $0x7dc] sm:$0xf0] }
  0x13   :  { %v2230_v11 = vld [vmem:[#allocation5 + $0x180] sm:$0xf]  ;;  %v3031_v12 = vor.u32 %v3312_v10, %v3030_v9  ;;  %1620 = vmatpush.bf16.msra.mxu2 %v2775_v8 }
  0x14   :  { %v3112_v13 = vld [vmem:[#allocation5 + $0x19c] sm:$0xf0] }
  0x15   :  { %v2486_v14 = vld [vmem:[#allocation5 + $0x380] sm:$0xf]  ;;  %v2231_v16 = vor.u32 %v3112_v13, %v2230_v11  ;;  %1633 = vmatpush.bf16.msra.mxu3 %v3031_v12 }
  0x16   :  { %v3176_v15 = vld [vmem:[#allocation5 + $0x39c] sm:$0xf0] }
  0x17   :  { %v2487_v17 = vor.u32 %v3176_v15, %v2486_v14  ;;  %v2742_v18 = vld [vmem:[#allocation5 + $0x580] sm:$0xf]  ;;  %1595 = vmatpush.bf16.msra.mxu0 %v2231_v16 }
  0x18   :  { %v3240_v19 = vld [vmem:[#allocation5 + $0x59c] sm:$0xf0] }
  0x19   :  { %v2998_v20 = vld [vmem:[#allocation5 + $0x780] sm:$0xf]  ;;  %v2743_v21 = vor.u32 %v3240_v19, %v2742_v18  ;;  %1608 = vmatpush.bf16.msra.mxu1 %v2487_v17 }
  0x1a   :  { %v3304_v22 = vld [vmem:[#allocation5 + $0x79c] sm:$0xf0] }
  0x1b   :  { %v2198_v23 = vld [vmem:[#allocation5 + $0x140] sm:$0xf]  ;;  %v2999_v25 = vor.u32 %v3304_v22, %v2998_v20  ;;  %1621 = vmatpush.bf16.msra.mxu2 %v2743_v21 }
  0x1c   :  { %v3104_v24 = vld [vmem:[#allocation5 + $0x15c] sm:$0xf0] }
  0x1d   :  { %v2454_v26 = vld [vmem:[#allocation5 + $0x340] sm:$0xf]  ;;  %v2199_v29 = vor.u32 %v3104_v24, %v2198_v23  ;;  %1634 = vmatpush.bf16.msra.mxu3 %v2999_v25 }
  0x1e   :  { %v3168_v27 = vld [vmem:[#allocation5 + $0x35c] sm:$0xf0] }
  0x1f   :  { %v2710_v28 = vld [vmem:[#allocation5 + $0x540] sm:$0xf]  ;;  %v2455_v33 = vor.u32 %v3168_v27, %v2454_v26  ;;  %1596 = vmatpush.bf16.msra.mxu0 %v2199_v29  ;;  %v2264_v29 = vld [vmem:[#allocation5 + $0x1e0] sm:$0xf0] }
  0x20   :  { %v3232_v30 = vld [vmem:[#allocation5 + $0x55c] sm:$0xf0] }
  0x21   :  { %v2966_v31 = vld [vmem:[#allocation5 + $0x740] sm:$0xf]  ;;  %v2711_v34 = vor.u32 %v3232_v30, %v2710_v28  ;;  %1609 = vmatpush.bf16.msra.mxu1 %v2455_v33  ;;  %v3116_v28 = vld [vmem:[#allocation5 + $0x1c4] sm:$0xf] }
  0x22   :  { %v3296_v32 = vld [vmem:[#allocation5 + $0x75c] sm:$0xf0]  ;;  %v3180_v30 = vld [vmem:[#allocation5 + $0x3c4] sm:$0xf] }
  0x23   :  { %v2166_v35 = vld [vmem:[#allocation5 + $0x100] sm:$0xf]  ;;  %v2967_v38 = vor.u32 %v3296_v32, %v2966_v31  ;;  %1622 = vmatpush.bf16.msra.mxu2 %v2711_v34  ;;  %v2520_v32 = vld [vmem:[#allocation5 + $0x3e0] sm:$0xf0] }
  0x24   :  { %v3096_v36 = vld [vmem:[#allocation5 + $0x11c] sm:$0xf0]  ;;  %v3244_v33 = vld [vmem:[#allocation5 + $0x5c4] sm:$0xf] }
  0x25   :  { %v2422_v37 = vld [vmem:[#allocation5 + $0x300] sm:$0xf]  ;;  %v2167_v44 = vor.u32 %v3096_v36, %v2166_v35  ;;  %1635 = vmatpush.bf16.msra.mxu3 %v2967_v38  ;;  %v2776_v34 = vld [vmem:[#allocation5 + $0x5e0] sm:$0xf0] }
  0x26   :  { %v3160_v39 = vld [vmem:[#allocation5 + $0x31c] sm:$0xf0]  ;;  %v3032_v38 = vld [vmem:[#allocation5 + $0x7e0] sm:$0xf0] }
  0x27   :  { %v2678_v40 = vld [vmem:[#allocation5 + $0x500] sm:$0xf]  ;;  %v2423_v45 = vor.u32 %v3160_v39, %v2422_v37  ;;  %1597 = vmatpush.bf16.msra.mxu0 %v2167_v44  ;;  %v3308_v37 = vld [vmem:[#allocation5 + $0x7c4] sm:$0xf] }
  0x28   :  { %v3224_v41 = vld [vmem:[#allocation5 + $0x51c] sm:$0xf0]  ;;  %v2232_v44 = vld [vmem:[#allocation5 + $0x1a0] sm:$0xf0] }
  0x29   :  { %v2934_v42 = vld [vmem:[#allocation5 + $0x700] sm:$0xf]  ;;  %v2679_v46 = vor.u32 %v3224_v41, %v2678_v40  ;;  %1610 = vmatpush.bf16.msra.mxu1 %v2423_v45  ;;  %v2267_v40 = vor.u32 %v3116_v28, %v2264_v29  ;;  %v2523_v41 = vor.u32 %v3180_v30, %v2520_v32  ;;  %v3172_v45 = vld [vmem:[#allocation5 + $0x384] sm:$0xf] }
  0x2a   :  { %v3288_v43 = vld [vmem:[#allocation5 + $0x71c] sm:$0xf0]  ;;  %v3212_v28 = vld [vmem:[#allocation5 + $0x4c4] sm:$0xf] }
  0x2b   :  { %v2134_v47 = vld [vmem:[#allocation5 + $0xc0] sm:$0xf]  ;;  %v2935_v50 = vor.u32 %v3288_v43, %v2934_v42  ;;  %1623 = vmatpush.bf16.msra.mxu2 %v2679_v46  ;;  %v2779_v42 = vor.u32 %v3244_v33, %v2776_v34  ;;  %v3108_v43 = vld [vmem:[#allocation5 + $0x184] sm:$0xf]  ;;  %v3035_v46 = vor.u32 %v3308_v37, %v3032_v38 }
  0x2c   :  { %v3088_v48 = vld [vmem:[#allocation5 + $0xdc] sm:$0xf0]  ;;  %v2648_v29 = vld [vmem:[#allocation5 + $0x4e0] sm:$0xf0] }
  0x2d   :  { %v2390_v49 = vld [vmem:[#allocation5 + $0x2c0] sm:$0xf]  ;;  %v2135_v56 = vor.u32 %v3088_v48, %v2134_v47  ;;  %1636 = vmatpush.bf16.msra.mxu3 %v2935_v50  ;;  %v2488_v47 = vld [vmem:[#allocation5 + $0x3a0] sm:$0xf0] }
  0x2e   :  { %v3152_v51 = vld [vmem:[#allocation5 + $0x2dc] sm:$0xf0]  ;;  %v3236_v48 = vld [vmem:[#allocation5 + $0x584] sm:$0xf] }
  0x2f   :  { %v2646_v52 = vld [vmem:[#allocation5 + $0x4c0] sm:$0xf]  ;;  %v2391_v57 = vor.u32 %v3152_v51, %v2390_v49  ;;  %1598 = vmatpush.bf16.msra.mxu0 %v2135_v56  ;;  %v2744_v49 = vld [vmem:[#allocation5 + $0x5a0] sm:$0xf0] }
  0x30   :  { %v3216_v53 = vld [vmem:[#allocation5 + $0x4dc] sm:$0xf0]  ;;  %v3300_v50 = vld [vmem:[#allocation5 + $0x784] sm:$0xf] }
  0x31   :  { %v2902_v54 = vld [vmem:[#allocation5 + $0x6c0] sm:$0xf]  ;;  %v2647_v58 = vor.u32 %v3216_v53, %v2646_v52  ;;  %1611 = vmatpush.bf16.msra.mxu1 %v2391_v57  ;;  %v3000_v51 = vld [vmem:[#allocation5 + $0x7a0] sm:$0xf0]  ;;  %v2235_v52 = vor.u32 %v3108_v43, %v2232_v44  ;;  %v2491_v53 = vor.u32 %v3172_v45, %v2488_v47 }
  0x32   :  { %v3280_v55 = vld [vmem:[#allocation5 + $0x6dc] sm:$0xf0]  ;;  %v2200_v56 = vld [vmem:[#allocation5 + $0x160] sm:$0xf0] }
  0x33   :  { %v2102_v59 = vld [vmem:[#allocation5 + $0x80] sm:$0xf]  ;;  %v2903_v62 = vor.u32 %v3280_v55, %v2902_v54  ;;  %1624 = vmatpush.bf16.msra.mxu2 %v2647_v58  ;;  %v2747_v54 = vor.u32 %v3236_v48, %v2744_v49  ;;  %v3100_v55 = vld [vmem:[#allocation5 + $0x144] sm:$0xf]  ;;  %v3003_v58 = vor.u32 %v3300_v50, %v3000_v51 }
  0x34   :  { %v3080_v60 = vld [vmem:[#allocation5 + $0x9c] sm:$0xf0]  ;;  %v3164_v57 = vld [vmem:[#allocation5 + $0x344] sm:$0xf] }
  0x35   :  { %v2358_v61 = vld [vmem:[#allocation5 + $0x280] sm:$0xf]  ;;  %v2103_v4 = vor.u32 %v3080_v60, %v2102_v59  ;;  %1637 = vmatpush.bf16.msra.mxu3 %v2903_v62  ;;  %v2456_v59 = vld [vmem:[#allocation5 + $0x360] sm:$0xf0] }
  0x36   :  { %v3144_v63 = vld [vmem:[#allocation5 + $0x29c] sm:$0xf0]  ;;  %v3228_v60 = vld [vmem:[#allocation5 + $0x544] sm:$0xf] }
  0x37   :  { %v2614_v0 = vld [vmem:[#allocation5 + $0x480] sm:$0xf]  ;;  %v2359_v5 = vor.u32 %v3144_v63, %v2358_v61  ;;  %1599 = vmatpush.bf16.msra.mxu0 %v2103_v4  ;;  %v2712_v61 = vld [vmem:[#allocation5 + $0x560] sm:$0xf0] }
  0x38   :  { %v3208_v1 = vld [vmem:[#allocation5 + $0x49c] sm:$0xf0]  ;;  %v3292_v62 = vld [vmem:[#allocation5 + $0x744] sm:$0xf] }
  0x39   :  { %v2870_v2 = vld [vmem:[#allocation5 + $0x680] sm:$0xf]  ;;  %v2615_v6 = vor.u32 %v3208_v1, %v2614_v0  ;;  %1612 = vmatpush.bf16.msra.mxu1 %v2359_v5  ;;  %v2968_v63 = vld [vmem:[#allocation5 + $0x760] sm:$0xf0]  ;;  %v2203_v0 = vor.u32 %v3100_v55, %v2200_v56  ;;  %v43_v1 = vld [vmem:[#allocation2 + $0x8] sm:$0xff] }
  0x3a   :  { %v3272_v3 = vld [vmem:[#allocation5 + $0x69c] sm:$0xf0]  ;;  %v3092_v4 = vld [vmem:[#allocation5 + $0x104] sm:$0xf] }
  0x3b   :  { %v2070_v7 = vld [vmem:[#allocation5 + $0x40] sm:$0xf]  ;;  %v2871_v10 = vor.u32 %v3272_v3, %v2870_v2  ;;  %1625 = vmatpush.bf16.msra.mxu2 %v2615_v6  ;;  %v2459_v2 = vor.u32 %v3164_v57, %v2456_v59  ;;  %v2715_v3 = vor.u32 %v3228_v60, %v2712_v61  ;;  %v2168_v5 = vld [vmem:[#allocation5 + $0x120] sm:$0xf0] }
  0x3c   :  { %v3072_v8 = vld [vmem:[#allocation5 + $0x5c] sm:$0xf0]  ;;  %v3156_v6 = vld [vmem:[#allocation5 + $0x304] sm:$0xf] }
  0x3d   :  { %v2326_v9 = vld [vmem:[#allocation5 + $0x240] sm:$0xf]  ;;  %v2071_v16 = vor.u32 %v3072_v8, %v2070_v7  ;;  %1638 = vmatpush.bf16.msra.mxu3 %v2871_v10  ;;  %v304_v7 = vunpack.c.l.b16 %v43_v1  ;;  %v305_v8 = vunpack.c.h.b16 %v43_v1  ;;  %v2424_v10 = vld [vmem:[#allocation5 + $0x320] sm:$0xf0] }
  0x3e   :  { %v3136_v11 = vld [vmem:[#allocation5 + $0x25c] sm:$0xf0]  ;;  %v3276_v32 = vld [vmem:[#allocation5 + $0x6c4] sm:$0xf] }
  0x3f   :  { %v2582_v12 = vld [vmem:[#allocation5 + $0x440] sm:$0xf]  ;;  %v2327_v19 = vor.u32 %v3136_v11, %v2326_v9  ;;  %1600 = vmatpush.bf16.msra.mxu0 %v2071_v16  ;;  %v2971_v9 = vor.u32 %v3292_v62, %v2968_v63  ;;  %v3220_v11 = vld [vmem:[#allocation5 + $0x504] sm:$0xf]  ;;  %v3427_v16 = vpack.c.b16 %v305_v8, %v305_v8  ;;  %v2526_v8 = vld [vmem:[#allocation5 + $0x3c8] sm:$0xf] }
  0x40   :  { %v3200_v13 = vld [vmem:[#allocation5 + $0x45c] sm:$0xf0]  ;;  %v2904_v33 = vld [vmem:[#allocation5 + $0x6e0] sm:$0xf0] }
  0x41   :  { %v2838_v14 = vld [vmem:[#allocation5 + $0x640] sm:$0xf]  ;;  %v2583_v20 = vor.u32 %v3200_v13, %v2582_v12  ;;  %1613 = vmatpush.bf16.msra.mxu1 %v2327_v19  ;;  %v2680_v12 = vld [vmem:[#allocation5 + $0x520] sm:$0xf0] }
  0x42   :  { %v3264_v15 = vld [vmem:[#allocation5 + $0x65c] sm:$0xf0]  ;;  %v3284_v13 = vld [vmem:[#allocation5 + $0x704] sm:$0xf] }
  0x43   :  { %v2038_v17 = vld [vmem:[#allocation5] sm:$0xf]  ;;  %v2839_v24 = vor.u32 %v3264_v15, %v2838_v14  ;;  %1626 = vmatpush.bf16.msra.mxu2 %v2583_v20  ;;  %v2936_v14 = vld [vmem:[#allocation5 + $0x720] sm:$0xf0]  ;;  %v3425_v15 = vpack.c.b16 %v304_v7, %v304_v7  ;;  %v3121_v7 = vld [vmem:[#allocation5 + $0x1e4] sm:$0xf0] }
  0x44   :  { %v3064_v18 = vld [vmem:[#allocation5 + $0x1c] sm:$0xf0]  ;;  %v3076_v37 = vld [vmem:[#allocation5 + $0x84] sm:$0xf] }
  0x45   :  { %v2294_v21 = vld [vmem:[#allocation5 + $0x200] sm:$0xf]  ;;  %v2039_v31 = vor.u32 %v3064_v18, %v2038_v17  ;;  %1639 = vmatpush.bf16.msra.mxu3 %v2839_v24  ;;  %v42_v17 = vld [vmem:[#allocation2] sm:$0xff]  ;;  %v2171_v18 = vor.u32 %v3092_v4, %v2168_v5  ;;  %v2136_v24 = vld [vmem:[#allocation5 + $0xe0] sm:$0xf0] }
  0x46   :  { %v3128_v22 = vld [vmem:[#allocation5 + $0x21c] sm:$0xf0]  ;;  %v302_v19 = vunpack.c.l.b16 %v42_v17  ;;  %v303_v20 = vunpack.c.h.b16 %v42_v17  ;;  %v2104_v38 = vld [vmem:[#allocation5 + $0xa0] sm:$0xf0]  ;;  %v3038_v17 = vld [vmem:[#allocation5 + $0x7c8] sm:$0xf] }
  0x47   :  { %v2550_v23 = vld [vmem:[#allocation5 + $0x400] sm:$0xf]  ;;  %v2295_v35 = vor.u32 %v3128_v22, %v2294_v21  ;;  %1601 = vmatpush.bf16.msra.mxu0 %v2039_v31  ;;  %v2427_v21 = vor.u32 %v3156_v6, %v2424_v10  ;;  %v2683_v22 = vor.u32 %v3220_v11, %v2680_v12  ;;  %v2616_v43 = vld [vmem:[#allocation5 + $0x4a0] sm:$0xf0]  ;;  %v2270_v6 = vld [vmem:[#allocation5 + $0x1c8] sm:$0xf] }
  0x48   :  { %v3192_v25 = vld [vmem:[#allocation5 + $0x41c] sm:$0xf0]  ;;  %v3430_v30 = vpack.c.b16 %v302_v19, %v302_v19  ;;  %v3432_v31 = vpack.c.b16 %v303_v20, %v303_v20  ;;  %v3268_v44 = vld [vmem:[#allocation5 + $0x684] sm:$0xf]  ;;  %v3185_v10 = vld [vmem:[#allocation5 + $0x3e4] sm:$0xf0]  ;;  %v2271_v20 = vor.u32 %v3121_v7, %v2270_v6 }
  0x49   :  { %v2806_v26 = vld [vmem:[#allocation5 + $0x600] sm:$0xf]  ;;  %v2551_v36 = vor.u32 %v3192_v25, %v2550_v23  ;;  %1614 = vmatpush.bf16.msra.mxu1 %v2295_v35  ;;  %v3084_v23 = vld [vmem:[#allocation5 + $0xc4] sm:$0xf]  ;;  %v2782_v11 = vld [vmem:[#allocation5 + $0x5c8] sm:$0xf] }
  0x4a   :  { %v3256_v27 = vld [vmem:[#allocation5 + $0x61c] sm:$0xf0]  ;;  %v3148_v25 = vld [vmem:[#allocation5 + $0x2c4] sm:$0xf]  ;;  %v2139_v34 = vor.u32 %v3084_v23, %v2136_v24  ;;  %1602 = vmatmul.bf16.vlgmr.msra.gmra.mxu0 %v3430_v30  ;;  %v3249_v12 = vld [vmem:[#allocation5 + $0x5e4] sm:$0xf0] }
  0x4b   :  { %v2807_v39 = vor.u32 %v3256_v27, %v2806_v26  ;;  %1627 = vmatpush.bf16.msra.mxu2 %v2551_v36  ;;  %1646 = vmatpush.bf16.msrb.mxu0 %v2267_v40  ;;  %v2939_v26 = vor.u32 %v3284_v13, %v2936_v14  ;;  %v2392_v27 = vld [vmem:[#allocation5 + $0x2e0] sm:$0xf0]  ;;  %v2651_v36 = vor.u32 %v3212_v28, %v2648_v29  ;;  %v2238_v23 = vld [vmem:[#allocation5 + $0x188] sm:$0xf] }
  0x4c   :  { %1615 = vmatmul.bf16.vlgmr.msra.gmra.mxu1 %v3432_v31  ;;  %v2395_v35 = vor.u32 %v3148_v25, %v2392_v27  ;;  %v2907_v40 = vor.u32 %v3276_v32, %v2904_v33  ;;  %v2872_v45 = vld [vmem:[#allocation5 + $0x6a0] sm:$0xf0]  ;;  %v3113_v24 = vld [vmem:[#allocation5 + $0x1a4] sm:$0xf0] }
  0x4d   :  { %1640 = vmatpush.bf16.msra.mxu3 %v2807_v39  ;;  %1659 = vmatpush.bf16.msrb.mxu1 %v2523_v41  ;;  %v3140_v39 = vld [vmem:[#allocation5 + $0x284] sm:$0xf]  ;;  %v2494_v25 = vld [vmem:[#allocation5 + $0x388] sm:$0xf] }
  0x4e   :  { %1628 = vmatmul.bf16.vlgmr.msra.gmra.mxu2 %v3425_v15  ;;  %v2360_v41 = vld [vmem:[#allocation5 + $0x2a0] sm:$0xf0]  ;;  %v3177_v27 = vld [vmem:[#allocation5 + $0x3a4] sm:$0xf0] }
  0x4f   :  { %1672 = vmatpush.bf16.msrb.mxu2 %v2779_v42  ;;  %1647 = vmatpush.bf16.msrb.mxu0 %v2235_v52  ;;  %v3204_v42 = vld [vmem:[#allocation5 + $0x484] sm:$0xf]  ;;  %v2363_v47 = vor.u32 %v3140_v39, %v2360_v41  ;;  %v2875_v52 = vor.u32 %v3268_v44, %v2872_v45  ;;  %v2750_v28 = vld [vmem:[#allocation5 + $0x588] sm:$0xf] }
  0x50   :  { %1641 = vmatmul.bf16.vlgmr.msra.gmra.mxu3 %v3427_v16  ;;  %v2619_v48 = vor.u32 %v3204_v42, %v2616_v43  ;;  %v3068_v49 = vld [vmem:[#allocation5 + $0x44] sm:$0xf]  ;;  %v3241_v29 = vld [vmem:[#allocation5 + $0x5a4] sm:$0xf0] }
  0x51   :  { %1685 = vmatpush.bf16.msrb.mxu3 %v3035_v46  ;;  %1660 = vmatpush.bf16.msrb.mxu1 %v2491_v53  ;;  %v2107_v46 = vor.u32 %v3076_v37, %v2104_v38  ;;  %v2072_v50 = vld [vmem:[#allocation5 + $0x60] sm:$0xf0]  ;;  %v3006_v32 = vld [vmem:[#allocation5 + $0x788] sm:$0xf] }
  0x52   :  { %v3132_v51 = vld [vmem:[#allocation5 + $0x244] sm:$0xf]  ;;  %v3305_v33 = vld [vmem:[#allocation5 + $0x7a4] sm:$0xf0] }
  0x53   :  { %1673 = vmatpush.bf16.msrb.mxu2 %v2747_v54  ;;  %1648 = vmatpush.bf16.msrb.mxu0 %v2203_v0  ;;  %v2328_v53 = vld [vmem:[#allocation5 + $0x260] sm:$0xf0]  ;;  %v2206_v37 = vld [vmem:[#allocation5 + $0x148] sm:$0xf] }
  0x54   :  { %v3196_v54 = vld [vmem:[#allocation5 + $0x444] sm:$0xf]  ;;  %v2331_v61 = vor.u32 %v3132_v51, %v2328_v53  ;;  %v3105_v38 = vld [vmem:[#allocation5 + $0x164] sm:$0xf0] }
  0x55   :  { %1686 = vmatpush.bf16.msrb.mxu3 %v3003_v58  ;;  %1661 = vmatpush.bf16.msrb.mxu1 %v2459_v2  ;;  %v2584_v55 = vld [vmem:[#allocation5 + $0x460] sm:$0xf0]  ;;  %v2075_v58 = vor.u32 %v3068_v49, %v2072_v50  ;;  %v2462_v39 = vld [vmem:[#allocation5 + $0x348] sm:$0xf] }
  0x56   :  { %v3260_v56 = vld [vmem:[#allocation5 + $0x644] sm:$0xf]  ;;  %v2587_v62 = vor.u32 %v3196_v54, %v2584_v55  ;;  %v3169_v41 = vld [vmem:[#allocation5 + $0x364] sm:$0xf0] }
  0x57   :  { %1674 = vmatpush.bf16.msrb.mxu2 %v2715_v3  ;;  %1649 = vmatpush.bf16.msrb.mxu0 %v2171_v18  ;;  %v2840_v57 = vld [vmem:[#allocation5 + $0x660] sm:$0xf0]  ;;  %v3313_v18 = vld [vmem:[#allocation5 + $0x7e4] sm:$0xf0] }
  0x58   :  { %v3060_v59 = vld [vmem:[#allocation5 + $0x4] sm:$0xf]  ;;  %v2843_v2 = vor.u32 %v3260_v56, %v2840_v57  ;;  %v2718_v42 = vld [vmem:[#allocation5 + $0x548] sm:$0xf] }
  0x59   :  { %1687 = vmatpush.bf16.msrb.mxu3 %v2971_v9  ;;  %1662 = vmatpush.bf16.msrb.mxu1 %v2427_v21  ;;  %v2040_v60 = vld [vmem:[#allocation5 + $0x20] sm:$0xf0]  ;;  %v2527_v21 = vor.u32 %v3185_v10, %v2526_v8  ;;  %v3233_v43 = vld [vmem:[#allocation5 + $0x564] sm:$0xf0] }
  0x5a   :  { %v3124_v63 = vld [vmem:[#allocation5 + $0x204] sm:$0xf]  ;;  %v2043_v9 = vor.u32 %v3060_v59, %v2040_v60  ;;  %v2974_v44 = vld [vmem:[#allocation5 + $0x748] sm:$0xf] }
  0x5b   :  { %1675 = vmatpush.bf16.msrb.mxu2 %v2683_v22  ;;  %1650 = vmatpush.bf16.msrb.mxu0 %v2139_v34  ;;  %v2296_v0 = vld [vmem:[#allocation5 + $0x220] sm:$0xf0]  ;;  %v2783_v22 = vor.u32 %v3249_v12, %v2782_v11  ;;  %v2239_v34 = vor.u32 %v3113_v24, %v2238_v23  ;;  %v3297_v45 = vld [vmem:[#allocation5 + $0x764] sm:$0xf0] }
  0x5c   :  { %v3188_v1 = vld [vmem:[#allocation5 + $0x404] sm:$0xf]  ;;  %v2299_v13 = vor.u32 %v3124_v63, %v2296_v0  ;;  %v2174_v49 = vld [vmem:[#allocation5 + $0x108] sm:$0xf] }
  0x5d   :  { %1688 = vmatpush.bf16.msrb.mxu3 %v2939_v26  ;;  %1663 = vmatpush.bf16.msrb.mxu1 %v2395_v35  ;;  %v2552_v3 = vld [vmem:[#allocation5 + $0x420] sm:$0xf0]  ;;  %v3039_v26 = vor.u32 %v3313_v18, %v3038_v17  ;;  %v2495_v35 = vor.u32 %v3177_v27, %v2494_v25  ;;  %v3097_v50 = vld [vmem:[#allocation5 + $0x124] sm:$0xf0] }
  0x5e   :  { %v3252_v4 = vld [vmem:[#allocation5 + $0x604] sm:$0xf]  ;;  %v2555_v14 = vor.u32 %v3188_v1, %v2552_v3  ;;  %v2430_v51 = vld [vmem:[#allocation5 + $0x308] sm:$0xf] }
  0x5f   :  { %1676 = vmatpush.bf16.msrb.mxu2 %v2651_v36  ;;  %1651 = vmatpush.bf16.msrb.mxu0 %v2107_v46  ;;  %v2808_v5 = vld [vmem:[#allocation5 + $0x620] sm:$0xf0]  ;;  %v2751_v36 = vor.u32 %v3241_v29, %v2750_v28  ;;  %v2207_v46 = vor.u32 %v3105_v38, %v2206_v37  ;;  %v3161_v53 = vld [vmem:[#allocation5 + $0x324] sm:$0xf0] }
  0x60   :  { %v2811_v19 = vor.u32 %v3252_v4, %v2808_v5  ;;  %v2686_v54 = vld [vmem:[#allocation5 + $0x508] sm:$0xf]  ;;  %v2431_v59 = vor.u32 %v3161_v53, %v2430_v51  ;;  %v3245_v51 = vld [vmem:[#allocation5 + $0x5cc] sm:$0xf] }
  0x61   :  { %1689 = vmatpush.bf16.msrb.mxu3 %v2907_v40  ;;  %1664 = vmatpush.bf16.msrb.mxu1 %v2363_v47  ;;  %v3007_v40 = vor.u32 %v3305_v33, %v3006_v32  ;;  %v2463_v47 = vor.u32 %v3169_v41, %v2462_v39  ;;  %v3225_v55 = vld [vmem:[#allocation5 + $0x524] sm:$0xf0] }
  0x62   :  { %v2942_v56 = vld [vmem:[#allocation5 + $0x708] sm:$0xf]  ;;  %v2687_v60 = vor.u32 %v3225_v55, %v2686_v54  ;;  %v3309_v55 = vld [vmem:[#allocation5 + $0x7cc] sm:$0xf] }
  0x63   :  { %1677 = vmatpush.bf16.msrb.mxu2 %v2619_v48  ;;  %1652 = vmatpush.bf16.msrb.mxu0 %v2075_v58  ;;  %v2719_v48 = vor.u32 %v3233_v43, %v2718_v42  ;;  %v3289_v57 = vld [vmem:[#allocation5 + $0x724] sm:$0xf0]  ;;  %v2175_v58 = vor.u32 %v3097_v50, %v2174_v49  ;;  %v2528_v50 = vld [vmem:[#allocation5 + $0x3e8] sm:$0xf0] }
  0x64   :  { %v2398_v63 = vld [vmem:[#allocation5 + $0x2c8] sm:$0xf]  ;;  %v2943_v0 = vor.u32 %v3289_v57, %v2942_v56  ;;  %v3040_v56 = vld [vmem:[#allocation5 + $0x7e8] sm:$0xf0] }
  0x65   :  { %1690 = vmatpush.bf16.msrb.mxu3 %v2875_v52  ;;  %1665 = vmatpush.bf16.msrb.mxu1 %v2331_v61  ;;  %v2975_v52 = vor.u32 %v3297_v45, %v2974_v44  ;;  %v2142_v61 = vld [vmem:[#allocation5 + $0xc8] sm:$0xf] }
  0x66   :  { %v3153_v1 = vld [vmem:[#allocation5 + $0x2e4] sm:$0xf0] }
  0x67   :  { %1678 = vmatpush.bf16.msrb.mxu2 %v2587_v62  ;;  %1653 = vmatpush.bf16.msrb.mxu0 %v2043_v9  ;;  %v3089_v62 = vld [vmem:[#allocation5 + $0xe4] sm:$0xf0]  ;;  %v2399_v7 = vor.u32 %v3153_v1, %v2398_v63  ;;  %v3173_v63 = vld [vmem:[#allocation5 + $0x38c] sm:$0xf] }
  0x68   :  { %v3217_v3 = vld [vmem:[#allocation5 + $0x4e4] sm:$0xf0]  ;;  %v2143_v6 = vor.u32 %v3089_v62, %v2142_v61  ;;  %v3109_v61 = vld [vmem:[#allocation5 + $0x18c] sm:$0xf] }
  0x69   :  { %1691 = vmatpush.bf16.msrb.mxu3 %v2843_v2  ;;  %1666 = vmatpush.bf16.msrb.mxu1 %v2299_v13  ;;  %v2654_v2 = vld [vmem:[#allocation5 + $0x4c8] sm:$0xf]  ;;  %v2240_v62 = vld [vmem:[#allocation5 + $0x1a8] sm:$0xf0] }
  0x6a   :  { %1654 = vmatmul.bf16.vlgmr.msrb.gmra.mxu0 %v3430_v30  ;;  %v2910_v4 = vld [vmem:[#allocation5 + $0x6c8] sm:$0xf]  ;;  %v2655_v8 = vor.u32 %v3217_v3, %v2654_v2  ;;  %v2496_v1 = vld [vmem:[#allocation5 + $0x3a8] sm:$0xf0] }
  0x6b   :  { %1679 = vmatpush.bf16.msrb.mxu2 %v2555_v14  ;;  %1698 = vmatpush.bf16.msra.mxu0 %v2271_v20  ;;  %v3281_v5 = vld [vmem:[#allocation5 + $0x6e4] sm:$0xf0]  ;;  %v3237_v2 = vld [vmem:[#allocation5 + $0x58c] sm:$0xf] }
  0x6c   :  { %1667 = vmatmul.bf16.vlgmr.msrb.gmra.mxu1 %v3432_v31  ;;  %v2110_v9 = vld [vmem:[#allocation5 + $0x88] sm:$0xf]  ;;  %v2911_v12 = vor.u32 %v3281_v5, %v2910_v4  ;;  %v2752_v3 = vld [vmem:[#allocation5 + $0x5a8] sm:$0xf0] }
  0x6d   :  { %1692 = vmatpush.bf16.msrb.mxu3 %v2811_v19  ;;  %1711 = vmatpush.bf16.msra.mxu1 %v2527_v21  ;;  %v3081_v10 = vld [vmem:[#allocation5 + $0xa4] sm:$0xf0]  ;;  %v3301_v4 = vld [vmem:[#allocation5 + $0x78c] sm:$0xf] }
  0x6e   :  { %1680 = vmatmul.bf16.vlgmr.msrb.gmra.mxu2 %v3425_v15  ;;  %v2366_v11 = vld [vmem:[#allocation5 + $0x288] sm:$0xf]  ;;  %v2111_v20 = vor.u32 %v3081_v10, %v2110_v9  ;;  %v3008_v5 = vld [vmem:[#allocation5 + $0x7a8] sm:$0xf0] }
  0x6f   :  { %1724 = vmatpush.bf16.msra.mxu2 %v2783_v22  ;;  %1699 = vmatpush.bf16.msra.mxu0 %v2239_v34  ;;  %v3145_v13 = vld [vmem:[#allocation5 + $0x2a4] sm:$0xf0]  ;;  %v3101_v9 = vld [vmem:[#allocation5 + $0x14c] sm:$0xf] }
  0x70   :  { %1693 = vmatmul.bf16.vlgmr.msrb.gmra.mxu3 %v3427_v16  ;;  %v2622_v14 = vld [vmem:[#allocation5 + $0x488] sm:$0xf]  ;;  %v2367_v21 = vor.u32 %v3145_v13, %v2366_v11  ;;  %v2208_v10 = vld [vmem:[#allocation5 + $0x168] sm:$0xf0] }
  0x71   :  { %1737 = vmatpush.bf16.msra.mxu3 %v3039_v26  ;;  %1712 = vmatpush.bf16.msra.mxu1 %v2495_v35  ;;  %v3209_v17 = vld [vmem:[#allocation5 + $0x4a4] sm:$0xf0]  ;;  %v3165_v11 = vld [vmem:[#allocation5 + $0x34c] sm:$0xf] }
  0x72   :  { %v2878_v18 = vld [vmem:[#allocation5 + $0x688] sm:$0xf]  ;;  %v2623_v22 = vor.u32 %v3209_v17, %v2622_v14  ;;  %v2464_v13 = vld [vmem:[#allocation5 + $0x368] sm:$0xf0] }
  0x73   :  { %1725 = vmatpush.bf16.msra.mxu2 %v2751_v36  ;;  %1700 = vmatpush.bf16.msra.mxu0 %v2207_v46  ;;  %v3273_v19 = vld [vmem:[#allocation5 + $0x6a4] sm:$0xf0]  ;;  %v3117_v46 = vld [vmem:[#allocation5 + $0x1cc] sm:$0xf] }
  0x74   :  { %v2078_v23 = vld [vmem:[#allocation5 + $0x48] sm:$0xf]  ;;  %v2879_v26 = vor.u32 %v3273_v19, %v2878_v18  ;;  %v3229_v14 = vld [vmem:[#allocation5 + $0x54c] sm:$0xf] }
  0x75   :  { %1738 = vmatpush.bf16.msra.mxu3 %v3007_v40  ;;  %1713 = vmatpush.bf16.msra.mxu1 %v2463_v47  ;;  %v3073_v24 = vld [vmem:[#allocation5 + $0x64] sm:$0xf0]  ;;  %v2272_v47 = vld [vmem:[#allocation5 + $0x1e8] sm:$0xf0] }
  0x76   :  { %v2334_v25 = vld [vmem:[#allocation5 + $0x248] sm:$0xf]  ;;  %v2079_v34 = vor.u32 %v3073_v24, %v2078_v23  ;;  %v2720_v17 = vld [vmem:[#allocation5 + $0x568] sm:$0xf0] }
  0x77   :  { %1726 = vmatpush.bf16.msra.mxu2 %v2719_v48  ;;  %1701 = vmatpush.bf16.msra.mxu0 %v2175_v58  ;;  %v3137_v27 = vld [vmem:[#allocation5 + $0x264] sm:$0xf0]  ;;  %v3181_v48 = vld [vmem:[#allocation5 + $0x3cc] sm:$0xf]  ;;  %v2275_v58 = vor.u32 %v3117_v46, %v2272_v47 }
  0x78   :  { %v2590_v28 = vld [vmem:[#allocation5 + $0x448] sm:$0xf]  ;;  %v2335_v37 = vor.u32 %v3137_v27, %v2334_v25  ;;  %v3293_v18 = vld [vmem:[#allocation5 + $0x74c] sm:$0xf] }
  0x79   :  { %1739 = vmatpush.bf16.msra.mxu3 %v2975_v52  ;;  %1714 = vmatpush.bf16.msra.mxu1 %v2431_v59  ;;  %v3201_v29 = vld [vmem:[#allocation5 + $0x464] sm:$0xf0]  ;;  %v2784_v52 = vld [vmem:[#allocation5 + $0x5e8] sm:$0xf0]  ;;  %v2531_v59 = vor.u32 %v3181_v48, %v2528_v50 }
  0x7a   :  { %v2846_v32 = vld [vmem:[#allocation5 + $0x648] sm:$0xf]  ;;  %v2591_v38 = vor.u32 %v3201_v29, %v2590_v28  ;;  %v2976_v19 = vld [vmem:[#allocation5 + $0x768] sm:$0xf0] }
  0x7b   :  { %1727 = vmatpush.bf16.msra.mxu2 %v2687_v60  ;;  %1702 = vmatpush.bf16.msra.mxu0 %v2143_v6  ;;  %v3265_v33 = vld [vmem:[#allocation5 + $0x664] sm:$0xf0]  ;;  %v2787_v60 = vor.u32 %v3245_v51, %v2784_v52  ;;  %v2243_v6 = vor.u32 %v3109_v61, %v2240_v62  ;;  %v3093_v23 = vld [vmem:[#allocation5 + $0x10c] sm:$0xf] }
  0x7c   :  { %v2046_v35 = vld [vmem:[#allocation5 + $0x8] sm:$0xf]  ;;  %v2847_v42 = vor.u32 %v3265_v33, %v2846_v32  ;;  %v2176_v24 = vld [vmem:[#allocation5 + $0x128] sm:$0xf0] }
  0x7d   :  { %1740 = vmatpush.bf16.msra.mxu3 %v2943_v0  ;;  %1715 = vmatpush.bf16.msra.mxu1 %v2399_v7  ;;  %v3065_v36 = vld [vmem:[#allocation5 + $0x24] sm:$0xf0]  ;;  %v3043_v0 = vor.u32 %v3309_v55, %v3040_v56  ;;  %v2499_v7 = vor.u32 %v3173_v63, %v2496_v1  ;;  %v3157_v25 = vld [vmem:[#allocation5 + $0x30c] sm:$0xf] }
  0x7e   :  { %v2302_v39 = vld [vmem:[#allocation5 + $0x208] sm:$0xf]  ;;  %v2047_v49 = vor.u32 %v3065_v36, %v2046_v35  ;;  %v2432_v27 = vld [vmem:[#allocation5 + $0x328] sm:$0xf0] }
  0x7f   :  { %1728 = vmatpush.bf16.msra.mxu2 %v2655_v8  ;;  %1703 = vmatpush.bf16.msra.mxu0 %v2111_v20  ;;  %v3129_v40 = vld [vmem:[#allocation5 + $0x224] sm:$0xf0]  ;;  %v2755_v8 = vor.u32 %v3237_v2, %v2752_v3  ;;  %v2211_v20 = vor.u32 %v3101_v9, %v2208_v10  ;;  %v3221_v28 = vld [vmem:[#allocation5 + $0x50c] sm:$0xf]  ;;  %v2435_v35 = vor.u32 %v3157_v25, %v2432_v27  ;;  %v2790_v25 = vld [vmem:[#allocation5 + $0x5d0] sm:$0xf] }
  0x80   :  { %v2558_v41 = vld [vmem:[#allocation5 + $0x408] sm:$0xf]  ;;  %v2303_v53 = vor.u32 %v3129_v40, %v2302_v39  ;;  %v2688_v29 = vld [vmem:[#allocation5 + $0x528] sm:$0xf0] }
  0x81   :  { %1741 = vmatpush.bf16.msra.mxu3 %v2911_v12  ;;  %1716 = vmatpush.bf16.msra.mxu1 %v2367_v21  ;;  %v3193_v43 = vld [vmem:[#allocation5 + $0x424] sm:$0xf0]  ;;  %v3011_v12 = vor.u32 %v3301_v4, %v3008_v5  ;;  %v2467_v21 = vor.u32 %v3165_v11, %v2464_v13  ;;  %v3285_v32 = vld [vmem:[#allocation5 + $0x70c] sm:$0xf]  ;;  %v2691_v36 = vor.u32 %v3221_v28, %v2688_v29  ;;  %v3046_v29 = vld [vmem:[#allocation5 + $0x7d0] sm:$0xf] }
  0x82   :  { %v2814_v44 = vld [vmem:[#allocation5 + $0x608] sm:$0xf]  ;;  %v2559_v54 = vor.u32 %v3193_v43, %v2558_v41  ;;  %v2944_v33 = vld [vmem:[#allocation5 + $0x728] sm:$0xf0] }
  0x83   :  { %1729 = vmatpush.bf16.msra.mxu2 %v2623_v22  ;;  %v3257_v45 = vld [vmem:[#allocation5 + $0x624] sm:$0xf0]  ;;  %1704 = vmatpush.bf16.msra.mxu0 %v2079_v34  ;;  %v2723_v22 = vor.u32 %v3229_v14, %v2720_v17  ;;  %v2179_v34 = vor.u32 %v3093_v23, %v2176_v24  ;;  %v3149_v39 = vld [vmem:[#allocation5 + $0x2cc] sm:$0xf]  ;;  %v2947_v40 = vor.u32 %v3285_v32, %v2944_v33  ;;  %v3186_v24 = vld [vmem:[#allocation5 + $0x3ec] sm:$0xf0] }
  0x84   :  { %v2815_v57 = vor.u32 %v3257_v45, %v2814_v44  ;;  %v2400_v41 = vld [vmem:[#allocation5 + $0x2e8] sm:$0xf0]  ;;  %v3314_v32 = vld [vmem:[#allocation5 + $0x7ec] sm:$0xf0] }
  0x85   :  { %1742 = vmatpush.bf16.msra.mxu3 %v2879_v26  ;;  %1717 = vmatpush.bf16.msra.mxu1 %v2335_v37  ;;  %v2979_v26 = vor.u32 %v3293_v18, %v2976_v19  ;;  %v3085_v37 = vld [vmem:[#allocation5 + $0xcc] sm:$0xf]  ;;  %v2403_v47 = vor.u32 %v3149_v39, %v2400_v41  ;;  %v2502_v39 = vld [vmem:[#allocation5 + $0x390] sm:$0xf] }
  0x86   :  { %v2656_v43 = vld [vmem:[#allocation5 + $0x4e8] sm:$0xf0]  ;;  %v3178_v41 = vld [vmem:[#allocation5 + $0x3ac] sm:$0xf0] }
  0x87   :  { %1730 = vmatpush.bf16.msra.mxu2 %v2591_v38  ;;  %1705 = vmatpush.bf16.msra.mxu0 %v2047_v49  ;;  %v2144_v38 = vld [vmem:[#allocation5 + $0xe8] sm:$0xf0] }
  0x88   :  { %v3277_v44 = vld [vmem:[#allocation5 + $0x6cc] sm:$0xf]  ;;  %v2147_v46 = vor.u32 %v3085_v37, %v2144_v38  ;;  %v2246_v37 = vld [vmem:[#allocation5 + $0x190] sm:$0xf] }
  0x89   :  { %1743 = vmatpush.bf16.msra.mxu3 %v2847_v42  ;;  %1718 = vmatpush.bf16.msra.mxu1 %v2303_v53  ;;  %v3213_v42 = vld [vmem:[#allocation5 + $0x4cc] sm:$0xf]  ;;  %v3114_v38 = vld [vmem:[#allocation5 + $0x1ac] sm:$0xf0] }
  0x8a   :  { %1706 = vmatmul.bf16.vlgmr.msra.gmra.mxu0 %v3430_v30  ;;  %v2912_v45 = vld [vmem:[#allocation5 + $0x6e8] sm:$0xf0]  ;;  %v2659_v48 = vor.u32 %v3213_v42, %v2656_v43  ;;  %v2758_v42 = vld [vmem:[#allocation5 + $0x590] sm:$0xf] }
  0x8b   :  { %1731 = vmatpush.bf16.msra.mxu2 %v2559_v54  ;;  %1750 = vmatpush.bf16.msrb.mxu0 %v2275_v58  ;;  %v3077_v49 = vld [vmem:[#allocation5 + $0x8c] sm:$0xf]  ;;  %v2915_v52 = vor.u32 %v3277_v44, %v2912_v45  ;;  %v3242_v43 = vld [vmem:[#allocation5 + $0x5ac] sm:$0xf0] }
  0x8c   :  { %1719 = vmatmul.bf16.vlgmr.msra.gmra.mxu1 %v3432_v31  ;;  %v2112_v50 = vld [vmem:[#allocation5 + $0xa8] sm:$0xf0]  ;;  %v3014_v44 = vld [vmem:[#allocation5 + $0x790] sm:$0xf] }
  0x8d   :  { %1744 = vmatpush.bf16.msra.mxu3 %v2815_v57  ;;  %1763 = vmatpush.bf16.msrb.mxu1 %v2531_v59  ;;  %v3141_v51 = vld [vmem:[#allocation5 + $0x28c] sm:$0xf]  ;;  %v2115_v58 = vor.u32 %v3077_v49, %v2112_v50  ;;  %v3306_v45 = vld [vmem:[#allocation5 + $0x7ac] sm:$0xf0] }
  0x8e   :  { %1732 = vmatmul.bf16.vlgmr.msra.gmra.mxu2 %v3425_v15  ;;  %v2368_v53 = vld [vmem:[#allocation5 + $0x2a8] sm:$0xf0]  ;;  %v2214_v49 = vld [vmem:[#allocation5 + $0x150] sm:$0xf] }
  0x8f   :  { %1776 = vmatpush.bf16.msrb.mxu2 %v2787_v60  ;;  %1751 = vmatpush.bf16.msrb.mxu0 %v2243_v6  ;;  %v3205_v54 = vld [vmem:[#allocation5 + $0x48c] sm:$0xf]  ;;  %v2371_v59 = vor.u32 %v3141_v51, %v2368_v53  ;;  %v3106_v50 = vld [vmem:[#allocation5 + $0x16c] sm:$0xf0] }
  0x90   :  { %1745 = vmatmul.bf16.vlgmr.msra.gmra.mxu3 %v3427_v16  ;;  %v2624_v55 = vld [vmem:[#allocation5 + $0x4a8] sm:$0xf0]  ;;  %v2470_v51 = vld [vmem:[#allocation5 + $0x350] sm:$0xf] }
  0x91   :  { %1789 = vmatpush.bf16.msrb.mxu3 %v3043_v0  ;;  %1764 = vmatpush.bf16.msrb.mxu1 %v2499_v7  ;;  %v3269_v56 = vld [vmem:[#allocation5 + $0x68c] sm:$0xf]  ;;  %v2627_v60 = vor.u32 %v3205_v54, %v2624_v55  ;;  %v3170_v53 = vld [vmem:[#allocation5 + $0x36c] sm:$0xf0] }
  0x92   :  { %v2880_v57 = vld [vmem:[#allocation5 + $0x6a8] sm:$0xf0]  ;;  %v2726_v54 = vld [vmem:[#allocation5 + $0x550] sm:$0xf] }
  0x93   :  { %1777 = vmatpush.bf16.msrb.mxu2 %v2755_v8  ;;  %1752 = vmatpush.bf16.msrb.mxu0 %v2211_v20  ;;  %v3069_v61 = vld [vmem:[#allocation5 + $0x4c] sm:$0xf]  ;;  %v2883_v0 = vor.u32 %v3269_v56, %v2880_v57  ;;  %v2278_v20 = vld [vmem:[#allocation5 + $0x1d0] sm:$0xf] }
  0x94   :  { %v2080_v62 = vld [vmem:[#allocation5 + $0x68] sm:$0xf0]  ;;  %v3234_v55 = vld [vmem:[#allocation5 + $0x56c] sm:$0xf0] }
  0x95   :  { %1790 = vmatpush.bf16.msrb.mxu3 %v3011_v12  ;;  %1765 = vmatpush.bf16.msrb.mxu1 %v2467_v21  ;;  %v3133_v63 = vld [vmem:[#allocation5 + $0x24c] sm:$0xf]  ;;  %v2083_v6 = vor.u32 %v3069_v61, %v2080_v62  ;;  %v3122_v21 = vld [vmem:[#allocation5 + $0x1ec] sm:$0xf0] }
  0x96   :  { %v2336_v1 = vld [vmem:[#allocation5 + $0x268] sm:$0xf0]  ;;  %v2982_v56 = vld [vmem:[#allocation5 + $0x750] sm:$0xf] }
  0x97   :  { %1778 = vmatpush.bf16.msrb.mxu2 %v2723_v22  ;;  %1753 = vmatpush.bf16.msrb.mxu0 %v2179_v34  ;;  %v3197_v2 = vld [vmem:[#allocation5 + $0x44c] sm:$0xf]  ;;  %v2339_v9 = vor.u32 %v3133_v63, %v2336_v1  ;;  %v2534_v22 = vld [vmem:[#allocation5 + $0x3d0] sm:$0xf]  ;;  %v2279_v34 = vor.u32 %v3122_v21, %v2278_v20 }
  0x98   :  { %v2592_v3 = vld [vmem:[#allocation5 + $0x468] sm:$0xf0]  ;;  %v3298_v57 = vld [vmem:[#allocation5 + $0x76c] sm:$0xf0] }
  0x99   :  { %1791 = vmatpush.bf16.msrb.mxu3 %v2979_v26  ;;  %1766 = vmatpush.bf16.msrb.mxu1 %v2435_v35  ;;  %v3261_v4 = vld [vmem:[#allocation5 + $0x64c] sm:$0xf]  ;;  %v2595_v10 = vor.u32 %v3197_v2, %v2592_v3  ;;  %v3250_v26 = vld [vmem:[#allocation5 + $0x5ec] sm:$0xf0]  ;;  %v2535_v35 = vor.u32 %v3186_v24, %v2534_v22 }
  0x9a   :  { %v2848_v5 = vld [vmem:[#allocation5 + $0x668] sm:$0xf0]  ;;  %v2182_v61 = vld [vmem:[#allocation5 + $0x110] sm:$0xf] }
  0x9b   :  { %1779 = vmatpush.bf16.msrb.mxu2 %v2691_v36  ;;  %1754 = vmatpush.bf16.msrb.mxu0 %v2147_v46  ;;  %v3061_v7 = vld [vmem:[#allocation5 + $0xc] sm:$0xf]  ;;  %v2851_v14 = vor.u32 %v3261_v4, %v2848_v5  ;;  %v2791_v36 = vor.u32 %v3250_v26, %v2790_v25  ;;  %v2247_v46 = vor.u32 %v3114_v38, %v2246_v37  ;;  %v3098_v62 = vld [vmem:[#allocation5 + $0x12c] sm:$0xf0] }
  0x9c   :  { %v2048_v8 = vld [vmem:[#allocation5 + $0x28] sm:$0xf0]  ;;  %v2438_v63 = vld [vmem:[#allocation5 + $0x310] sm:$0xf] }
  0x9d   :  { %1792 = vmatpush.bf16.msrb.mxu3 %v2947_v40  ;;  %1767 = vmatpush.bf16.msrb.mxu1 %v2403_v47  ;;  %v3125_v11 = vld [vmem:[#allocation5 + $0x20c] sm:$0xf]  ;;  %v2051_v23 = vor.u32 %v3061_v7, %v2048_v8  ;;  %v3047_v40 = vor.u32 %v3314_v32, %v3046_v29  ;;  %v2503_v47 = vor.u32 %v3178_v41, %v2502_v39  ;;  %v3162_v1 = vld [vmem:[#allocation5 + $0x32c] sm:$0xf0] }
  0x9e   :  { %v2304_v12 = vld [vmem:[#allocation5 + $0x228] sm:$0xf0]  ;;  %v2694_v2 = vld [vmem:[#allocation5 + $0x510] sm:$0xf]  ;;  %v2439_v7 = vor.u32 %v3162_v1, %v2438_v63  ;;  %v3246_v63 = vld [vmem:[#allocation5 + $0x5d4] sm:$0xf] }
  0x9f   :  { %1780 = vmatpush.bf16.msrb.mxu2 %v2659_v48  ;;  %1755 = vmatpush.bf16.msrb.mxu0 %v2115_v58  ;;  %v3189_v13 = vld [vmem:[#allocation5 + $0x40c] sm:$0xf]  ;;  %v2307_v27 = vor.u32 %v3125_v11, %v2304_v12  ;;  %v2759_v48 = vor.u32 %v3242_v43, %v2758_v42  ;;  %v2215_v58 = vor.u32 %v3106_v50, %v2214_v49  ;;  %v3226_v3 = vld [vmem:[#allocation5 + $0x52c] sm:$0xf0] }
  0xa0   :  { %v2560_v17 = vld [vmem:[#allocation5 + $0x428] sm:$0xf0]  ;;  %v2950_v4 = vld [vmem:[#allocation5 + $0x710] sm:$0xf]  ;;  %v2695_v8 = vor.u32 %v3226_v3, %v2694_v2  ;;  %v3310_v3 = vld [vmem:[#allocation5 + $0x7d4] sm:$0xf] }
  0xa1   :  { %1793 = vmatpush.bf16.msrb.mxu3 %v2915_v52  ;;  %1768 = vmatpush.bf16.msrb.mxu1 %v2371_v59  ;;  %v3253_v18 = vld [vmem:[#allocation5 + $0x60c] sm:$0xf]  ;;  %v2563_v28 = vor.u32 %v3189_v13, %v2560_v17  ;;  %v3015_v52 = vor.u32 %v3306_v45, %v3014_v44  ;;  %v2471_v59 = vor.u32 %v3170_v53, %v2470_v51  ;;  %v3290_v5 = vld [vmem:[#allocation5 + $0x72c] sm:$0xf0] }
  0xa2   :  { %v2816_v19 = vld [vmem:[#allocation5 + $0x628] sm:$0xf0]  ;;  %v2406_v11 = vld [vmem:[#allocation5 + $0x2d0] sm:$0xf]  ;;  %v2951_v12 = vor.u32 %v3290_v5, %v2950_v4  ;;  %v3048_v4 = vld [vmem:[#allocation5 + $0x7f0] sm:$0xf0] }
  0xa3   :  { %1781 = vmatpush.bf16.msrb.mxu2 %v2627_v60  ;;  %1756 = vmatpush.bf16.msrb.mxu0 %v2083_v6  ;;  %v2819_v33 = vor.u32 %v3253_v18, %v2816_v19  ;;  %v2727_v60 = vor.u32 %v3234_v55, %v2726_v54  ;;  %v2183_v6 = vor.u32 %v3098_v62, %v2182_v61  ;;  %v3154_v13 = vld [vmem:[#allocation5 + $0x2ec] sm:$0xf0]  ;;  %v2536_v62 = vld [vmem:[#allocation5 + $0x3f0] sm:$0xf0] }
  0xa4   :  { %v3218_v17 = vld [vmem:[#allocation5 + $0x4ec] sm:$0xf0]  ;;  %v2407_v21 = vor.u32 %v3154_v13, %v2406_v11  ;;  %v3174_v11 = vld [vmem:[#allocation5 + $0x394] sm:$0xf] }
  0xa5   :  { %1794 = vmatpush.bf16.msrb.mxu3 %v2883_v0  ;;  %1769 = vmatpush.bf16.msrb.mxu1 %v2339_v9  ;;  %v2983_v0 = vor.u32 %v3298_v57, %v2982_v56  ;;  %v2150_v9 = vld [vmem:[#allocation5 + $0xd0] sm:$0xf]  ;;  %v2504_v13 = vld [vmem:[#allocation5 + $0x3b0] sm:$0xf0] }
  0xa6   :  { %v2918_v18 = vld [vmem:[#allocation5 + $0x6d0] sm:$0xf] }
  0xa7   :  { %1782 = vmatpush.bf16.msrb.mxu2 %v2595_v10  ;;  %1757 = vmatpush.bf16.msrb.mxu0 %v2051_v23  ;;  %v3090_v10 = vld [vmem:[#allocation5 + $0xec] sm:$0xf0] }
  0xa8   :  { %v3282_v19 = vld [vmem:[#allocation5 + $0x6ec] sm:$0xf0]  ;;  %v2151_v20 = vor.u32 %v3090_v10, %v2150_v9  ;;  %v3110_v9 = vld [vmem:[#allocation5 + $0x194] sm:$0xf] }
  0xa9   :  { %1795 = vmatpush.bf16.msrb.mxu3 %v2851_v14  ;;  %1770 = vmatpush.bf16.msrb.mxu1 %v2307_v27  ;;  %v2662_v14 = vld [vmem:[#allocation5 + $0x4d0] sm:$0xf]  ;;  %v2919_v26 = vor.u32 %v3282_v19, %v2918_v18  ;;  %v2248_v10 = vld [vmem:[#allocation5 + $0x1b0] sm:$0xf0] }
  0xaa   :  { %1758 = vmatmul.bf16.vlgmr.msrb.gmra.mxu0 %v3430_v30  ;;  %v2663_v22 = vor.u32 %v3218_v17, %v2662_v14  ;;  %v2118_v23 = vld [vmem:[#allocation5 + $0x90] sm:$0xf]  ;;  %v3238_v14 = vld [vmem:[#allocation5 + $0x594] sm:$0xf] }
  0xab   :  { %1783 = vmatpush.bf16.msrb.mxu2 %v2563_v28  ;;  %1802 = vmatpush.bf16.msra.mxu0 %v2279_v34  ;;  %v3082_v24 = vld [vmem:[#allocation5 + $0xac] sm:$0xf0]  ;;  %v2760_v17 = vld [vmem:[#allocation5 + $0x5b0] sm:$0xf0] }
  0xac   :  { %1771 = vmatmul.bf16.vlgmr.msrb.gmra.mxu1 %v3432_v31  ;;  %v2374_v25 = vld [vmem:[#allocation5 + $0x290] sm:$0xf]  ;;  %v2119_v34 = vor.u32 %v3082_v24, %v2118_v23  ;;  %v3302_v18 = vld [vmem:[#allocation5 + $0x794] sm:$0xf] }
  0xad   :  { %1796 = vmatpush.bf16.msrb.mxu3 %v2819_v33  ;;  %1815 = vmatpush.bf16.msra.mxu1 %v2535_v35  ;;  %v3146_v27 = vld [vmem:[#allocation5 + $0x2ac] sm:$0xf0]  ;;  %v3016_v19 = vld [vmem:[#allocation5 + $0x7b0] sm:$0xf0] }
  0xae   :  { %1784 = vmatmul.bf16.vlgmr.msrb.gmra.mxu2 %v3425_v15  ;;  %v2630_v28 = vld [vmem:[#allocation5 + $0x490] sm:$0xf]  ;;  %v2375_v35 = vor.u32 %v3146_v27, %v2374_v25  ;;  %v3102_v23 = vld [vmem:[#allocation5 + $0x154] sm:$0xf] }
  0xaf   :  { %1828 = vmatpush.bf16.msra.mxu2 %v2791_v36  ;;  %1803 = vmatpush.bf16.msra.mxu0 %v2247_v46  ;;  %v3210_v29 = vld [vmem:[#allocation5 + $0x4ac] sm:$0xf0]  ;;  %v2216_v24 = vld [vmem:[#allocation5 + $0x170] sm:$0xf0] }
  0xb0   :  { %1797 = vmatmul.bf16.vlgmr.msrb.gmra.mxu3 %v3427_v16  ;;  %v2886_v32 = vld [vmem:[#allocation5 + $0x690] sm:$0xf]  ;;  %v2631_v36 = vor.u32 %v3210_v29, %v2630_v28  ;;  %v3166_v25 = vld [vmem:[#allocation5 + $0x354] sm:$0xf] }
  0xb1   :  { %1841 = vmatpush.bf16.msra.mxu3 %v3047_v40  ;;  %1816 = vmatpush.bf16.msra.mxu1 %v2503_v47  ;;  %v3274_v33 = vld [vmem:[#allocation5 + $0x6ac] sm:$0xf0]  ;;  %v2472_v27 = vld [vmem:[#allocation5 + $0x370] sm:$0xf0] }
  0xb2   :  { %v2086_v37 = vld [vmem:[#allocation5 + $0x50] sm:$0xf]  ;;  %v2887_v40 = vor.u32 %v3274_v33, %v2886_v32  ;;  %v3230_v28 = vld [vmem:[#allocation5 + $0x554] sm:$0xf] }
  0xb3   :  { %1829 = vmatpush.bf16.msra.mxu2 %v2759_v48  ;;  %1804 = vmatpush.bf16.msra.mxu0 %v2215_v58  ;;  %v3074_v38 = vld [vmem:[#allocation5 + $0x6c] sm:$0xf0]  ;;  %v3118_v58 = vld [vmem:[#allocation5 + $0x1d4] sm:$0xf] }
  0xb4   :  { %v2342_v39 = vld [vmem:[#allocation5 + $0x250] sm:$0xf]  ;;  %v2087_v46 = vor.u32 %v3074_v38, %v2086_v37  ;;  %v2728_v29 = vld [vmem:[#allocation5 + $0x570] sm:$0xf0] }
  0xb5   :  { %1842 = vmatpush.bf16.msra.mxu3 %v3015_v52  ;;  %1817 = vmatpush.bf16.msra.mxu1 %v2471_v59  ;;  %v3138_v41 = vld [vmem:[#allocation5 + $0x26c] sm:$0xf0]  ;;  %v2280_v59 = vld [vmem:[#allocation5 + $0x1f0] sm:$0xf0] }
  0xb6   :  { %v2598_v42 = vld [vmem:[#allocation5 + $0x450] sm:$0xf]  ;;  %v2343_v49 = vor.u32 %v3138_v41, %v2342_v39  ;;  %v3294_v32 = vld [vmem:[#allocation5 + $0x754] sm:$0xf] }
  0xb7   :  { %1830 = vmatpush.bf16.msra.mxu2 %v2727_v60  ;;  %1805 = vmatpush.bf16.msra.mxu0 %v2183_v6  ;;  %v3202_v43 = vld [vmem:[#allocation5 + $0x46c] sm:$0xf0]  ;;  %v3182_v60 = vld [vmem:[#allocation5 + $0x3d4] sm:$0xf]  ;;  %v2283_v6 = vor.u32 %v3118_v58, %v2280_v59 }
  0xb8   :  { %v2854_v44 = vld [vmem:[#allocation5 + $0x650] sm:$0xf]  ;;  %v2599_v50 = vor.u32 %v3202_v43, %v2598_v42  ;;  %v2984_v33 = vld [vmem:[#allocation5 + $0x770] sm:$0xf0] }
  0xb9   :  { %1843 = vmatpush.bf16.msra.mxu3 %v2983_v0  ;;  %1818 = vmatpush.bf16.msra.mxu1 %v2439_v7  ;;  %v3266_v45 = vld [vmem:[#allocation5 + $0x66c] sm:$0xf0]  ;;  %v2792_v0 = vld [vmem:[#allocation5 + $0x5f0] sm:$0xf0]  ;;  %v2539_v7 = vor.u32 %v3182_v60, %v2536_v62 }
  0xba   :  { %v2054_v47 = vld [vmem:[#allocation5 + $0x10] sm:$0xf]  ;;  %v2855_v54 = vor.u32 %v3266_v45, %v2854_v44  ;;  %v3094_v37 = vld [vmem:[#allocation5 + $0x114] sm:$0xf] }
  0xbb   :  { %1831 = vmatpush.bf16.msra.mxu2 %v2695_v8  ;;  %1806 = vmatpush.bf16.msra.mxu0 %v2151_v20  ;;  %v3066_v48 = vld [vmem:[#allocation5 + $0x2c] sm:$0xf0]  ;;  %v2795_v8 = vor.u32 %v3246_v63, %v2792_v0  ;;  %v2251_v20 = vor.u32 %v3110_v9, %v2248_v10  ;;  %v2184_v38 = vld [vmem:[#allocation5 + $0x130] sm:$0xf0] }
  0xbc   :  { %v2310_v51 = vld [vmem:[#allocation5 + $0x210] sm:$0xf]  ;;  %v2055_v61 = vor.u32 %v3066_v48, %v2054_v47  ;;  %v3158_v39 = vld [vmem:[#allocation5 + $0x314] sm:$0xf] }
  0xbd   :  { %1844 = vmatpush.bf16.msra.mxu3 %v2951_v12  ;;  %1819 = vmatpush.bf16.msra.mxu1 %v2407_v21  ;;  %v3130_v52 = vld [vmem:[#allocation5 + $0x22c] sm:$0xf0]  ;;  %v3051_v12 = vor.u32 %v3310_v3, %v3048_v4  ;;  %v2507_v21 = vor.u32 %v3174_v11, %v2504_v13  ;;  %v2440_v41 = vld [vmem:[#allocation5 + $0x330] sm:$0xf0] }
  0xbe   :  { %v2566_v53 = vld [vmem:[#allocation5 + $0x410] sm:$0xf]  ;;  %v2311_v1 = vor.u32 %v3130_v52, %v2310_v51  ;;  %v3222_v42 = vld [vmem:[#allocation5 + $0x514] sm:$0xf]  ;;  %v2443_v47 = vor.u32 %v3158_v39, %v2440_v41  ;;  %v3123_v41 = vld [vmem:[#allocation5 + $0x1f4] sm:$0xf0] }
  0xbf   :  { %1832 = vmatpush.bf16.msra.mxu2 %v2663_v22  ;;  %1807 = vmatpush.bf16.msra.mxu0 %v2119_v34  ;;  %v3194_v55 = vld [vmem:[#allocation5 + $0x42c] sm:$0xf0]  ;;  %v2763_v22 = vor.u32 %v3238_v14, %v2760_v17  ;;  %v2219_v34 = vor.u32 %v3102_v23, %v2216_v24  ;;  %v2696_v43 = vld [vmem:[#allocation5 + $0x530] sm:$0xf0] }
  0xc0   :  { %v2822_v56 = vld [vmem:[#allocation5 + $0x610] sm:$0xf]  ;;  %v2567_v2 = vor.u32 %v3194_v55, %v2566_v53  ;;  %v3286_v44 = vld [vmem:[#allocation5 + $0x714] sm:$0xf]  ;;  %v2699_v48 = vor.u32 %v3222_v42, %v2696_v43  ;;  %v2542_v42 = vld [vmem:[#allocation5 + $0x3d8] sm:$0xf] }
  0xc1   :  { %1845 = vmatpush.bf16.msra.mxu3 %v2919_v26  ;;  %1820 = vmatpush.bf16.msra.mxu1 %v2375_v35  ;;  %v3258_v57 = vld [vmem:[#allocation5 + $0x62c] sm:$0xf0]  ;;  %v3019_v26 = vor.u32 %v3302_v18, %v3016_v19  ;;  %v2475_v35 = vor.u32 %v3166_v25, %v2472_v27  ;;  %v2952_v45 = vld [vmem:[#allocation5 + $0x730] sm:$0xf0] }
  0xc2   :  { %v2823_v5 = vor.u32 %v3258_v57, %v2822_v56  ;;  %v3150_v51 = vld [vmem:[#allocation5 + $0x2d4] sm:$0xf]  ;;  %v2955_v52 = vor.u32 %v3286_v44, %v2952_v45  ;;  %v3187_v44 = vld [vmem:[#allocation5 + $0x3f4] sm:$0xf0] }
  0xc3   :  { %1833 = vmatpush.bf16.msra.mxu2 %v2631_v36  ;;  %1808 = vmatpush.bf16.msra.mxu0 %v2087_v46  ;;  %v2731_v36 = vor.u32 %v3230_v28, %v2728_v29  ;;  %v2187_v46 = vor.u32 %v3094_v37, %v2184_v38  ;;  %v2408_v53 = vld [vmem:[#allocation5 + $0x2f0] sm:$0xf0]  ;;  %v2798_v45 = vld [vmem:[#allocation5 + $0x5d8] sm:$0xf] }
  0xc4   :  { %v2664_v55 = vld [vmem:[#allocation5 + $0x4f0] sm:$0xf0]  ;;  %v2411_v59 = vor.u32 %v3150_v51, %v2408_v53  ;;  %v3315_v51 = vld [vmem:[#allocation5 + $0x7f4] sm:$0xf0] }
  0xc5   :  { %1846 = vmatpush.bf16.msra.mxu3 %v2887_v40  ;;  %1821 = vmatpush.bf16.msra.mxu1 %v2343_v49  ;;  %v2987_v40 = vor.u32 %v3294_v32, %v2984_v33  ;;  %v3086_v49 = vld [vmem:[#allocation5 + $0xd4] sm:$0xf] }
  0xc6   :  { %v3278_v56 = vld [vmem:[#allocation5 + $0x6d4] sm:$0xf] }
  0xc7   :  { %1834 = vmatpush.bf16.msra.mxu2 %v2599_v50  ;;  %1809 = vmatpush.bf16.msra.mxu0 %v2055_v61  ;;  %v2152_v50 = vld [vmem:[#allocation5 + $0xf0] sm:$0xf0] }
  0xc8   :  { %v2920_v57 = vld [vmem:[#allocation5 + $0x6f0] sm:$0xf0]  ;;  %v2155_v58 = vor.u32 %v3086_v49, %v2152_v50  ;;  %v3054_v50 = vld [vmem:[#allocation5 + $0x7d8] sm:$0xf] }
  0xc9   :  { %1847 = vmatpush.bf16.msra.mxu3 %v2855_v54  ;;  %1822 = vmatpush.bf16.msra.mxu1 %v2311_v1  ;;  %v3214_v54 = vld [vmem:[#allocation5 + $0x4d4] sm:$0xf]  ;;  %v2923_v0 = vor.u32 %v3278_v56, %v2920_v57  ;;  %v2254_v57 = vld [vmem:[#allocation5 + $0x198] sm:$0xf] }
  0xca   :  { %1810 = vmatmul.bf16.vlgmr.msra.gmra.mxu0 %v3430_v30  ;;  %v2667_v60 = vor.u32 %v3214_v54, %v2664_v55  ;;  %v3078_v61 = vld [vmem:[#allocation5 + $0x94] sm:$0xf]  ;;  %v2543_v55 = vor.u32 %v3187_v44, %v2542_v42  ;;  %v3155_v42 = vld [vmem:[#allocation5 + $0x2f4] sm:$0xf0] }
  0xcb   :  { %1835 = vmatpush.bf16.msra.mxu2 %v2567_v2  ;;  %1854 = vmatpush.bf16.msrb.mxu0 %v2283_v6  ;;  %v2120_v62 = vld [vmem:[#allocation5 + $0xb0] sm:$0xf0]  ;;  %v3219_v44 = vld [vmem:[#allocation5 + $0x4f4] sm:$0xf0] }
  0xcc   :  { %1823 = vmatmul.bf16.vlgmr.msra.gmra.mxu1 %v3432_v31  ;;  %v3142_v63 = vld [vmem:[#allocation5 + $0x294] sm:$0xf]  ;;  %v2123_v6 = vor.u32 %v3078_v61, %v2120_v62  ;;  %v3055_v61 = vor.u32 %v3315_v51, %v3054_v50  ;;  %v3179_v62 = vld [vmem:[#allocation5 + $0x3b4] sm:$0xf0] }
  0xcd   :  { %1848 = vmatpush.bf16.msra.mxu3 %v2823_v5  ;;  %1867 = vmatpush.bf16.msrb.mxu1 %v2539_v7  ;;  %v2376_v1 = vld [vmem:[#allocation5 + $0x2b0] sm:$0xf0]  ;;  %v2126_v51 = vld [vmem:[#allocation5 + $0x98] sm:$0xf] }
  0xce   :  { %1836 = vmatmul.bf16.vlgmr.msra.gmra.mxu2 %v3425_v15  ;;  %v3206_v2 = vld [vmem:[#allocation5 + $0x494] sm:$0xf]  ;;  %v2379_v7 = vor.u32 %v3142_v63, %v2376_v1  ;;  %v2766_v63 = vld [vmem:[#allocation5 + $0x598] sm:$0xf] }
  0xcf   :  { %1880 = vmatpush.bf16.msrb.mxu2 %v2795_v8  ;;  %1855 = vmatpush.bf16.msrb.mxu0 %v2251_v20  ;;  %v2632_v3 = vld [vmem:[#allocation5 + $0x4b0] sm:$0xf0]  ;;  %v3022_v1 = vld [vmem:[#allocation5 + $0x798] sm:$0xf] }
  0xd0   :  { %1849 = vmatmul.bf16.vlgmr.msra.gmra.mxu3 %v3427_v16  ;;  %v3270_v4 = vld [vmem:[#allocation5 + $0x694] sm:$0xf]  ;;  %v2635_v8 = vor.u32 %v3206_v2, %v2632_v3  ;;  %v3307_v2 = vld [vmem:[#allocation5 + $0x7b4] sm:$0xf0] }
  0xd1   :  { %1893 = vmatpush.bf16.msrb.mxu3 %v3051_v12  ;;  %1868 = vmatpush.bf16.msrb.mxu1 %v2507_v21  ;;  %v2888_v5 = vld [vmem:[#allocation5 + $0x6b0] sm:$0xf0]  ;;  %v1616_v12 = vpop.f32.mrf.mxu1  ;;  %v1603_v21 = vpop.f32.mrf.mxu0 }
  0xd2   :  { %v3070_v9 = vld [vmem:[#allocation5 + $0x54] sm:$0xf]  ;;  %v2891_v13 = vor.u32 %v3270_v4, %v2888_v5  ;;  %v1617_v25 = vadd.f32 %v1616_v12, %v1603_v21  ;;  %v1629_v33 = vpop.f32.mrf.mxu2  ;;  %v3171_v12 = vld [vmem:[#allocation5 + $0x374] sm:$0xf0] }
  0xd3   :  { %1881 = vmatpush.bf16.msrb.mxu2 %v2763_v22  ;;  %1856 = vmatpush.bf16.msrb.mxu0 %v2219_v34  ;;  %v2088_v10 = vld [vmem:[#allocation5 + $0x70] sm:$0xf0]  ;;  %v1642_v39 = vpop.f32.mrf.mxu3 }
  0xd4   :  { %v3134_v11 = vld [vmem:[#allocation5 + $0x254] sm:$0xf]  ;;  %v2091_v22 = vor.u32 %v3070_v9, %v2088_v10  ;;  %v1630_v38 = vadd.f32 %v1629_v33, %v1617_v25  ;;  %v3107_v9 = vld [vmem:[#allocation5 + $0x174] sm:$0xf0] }
  0xd5   :  { %1894 = vmatpush.bf16.msrb.mxu3 %v3019_v26  ;;  %1869 = vmatpush.bf16.msrb.mxu1 %v2475_v35  ;;  %v2344_v14 = vld [vmem:[#allocation5 + $0x270] sm:$0xf0]  ;;  %v2478_v10 = vld [vmem:[#allocation5 + $0x358] sm:$0xf] }
  0xd6   :  { %v3198_v17 = vld [vmem:[#allocation5 + $0x454] sm:$0xf]  ;;  %v2347_v26 = vor.u32 %v3134_v11, %v2344_v14  ;;  %v3023_v11 = vor.u32 %v3307_v2, %v3022_v1  ;;  %v3235_v14 = vld [vmem:[#allocation5 + $0x574] sm:$0xf0] }
  0xd7   :  { %1882 = vmatpush.bf16.msrb.mxu2 %v2731_v36  ;;  %1857 = vmatpush.bf16.msrb.mxu0 %v2187_v46  ;;  %v2600_v18 = vld [vmem:[#allocation5 + $0x470] sm:$0xf0]  ;;  %v3251_v46 = vld [vmem:[#allocation5 + $0x5f4] sm:$0xf0] }
  0xd8   :  { %v3262_v19 = vld [vmem:[#allocation5 + $0x654] sm:$0xf]  ;;  %v2603_v27 = vor.u32 %v3198_v17, %v2600_v18  ;;  %v2799_v56 = vor.u32 %v3251_v46, %v2798_v45  ;;  %v2990_v17 = vld [vmem:[#allocation5 + $0x758] sm:$0xf] }
  0xd9   :  { %1895 = vmatpush.bf16.msrb.mxu3 %v2987_v40  ;;  %1870 = vmatpush.bf16.msrb.mxu1 %v2443_v47  ;;  %v2856_v20 = vld [vmem:[#allocation5 + $0x670] sm:$0xf0]  ;;  %v2286_v40 = vld [vmem:[#allocation5 + $0x1d8] sm:$0xf]  ;;  %v1643_v47 = vadd.f32 %v1642_v39, %v1630_v38 }
  0xda   :  { %v3062_v23 = vld [vmem:[#allocation5 + $0x14] sm:$0xf]  ;;  %v2859_v34 = vor.u32 %v3262_v19, %v2856_v20  ;;  %v2287_v54 = vor.u32 %v3123_v41, %v2286_v40  ;;  %v1631_v3 = vpop.f32.mrf.mxu2  ;;  %v3299_v18 = vld [vmem:[#allocation5 + $0x774] sm:$0xf0]  ;;  %v2479_v20 = vor.u32 %v3171_v12, %v2478_v10 }
  0xdb   :  { %1883 = vmatpush.bf16.msrb.mxu2 %v2699_v48  ;;  %1858 = vmatpush.bf16.msrb.mxu0 %v2155_v58  ;;  %v2056_v24 = vld [vmem:[#allocation5 + $0x30] sm:$0xf0]  ;;  %2010 = vst [vmem:[#allocation7] sm:$0xff] %v1643_v47  ;;  %v3115_v58 = vld [vmem:[#allocation5 + $0x1b4] sm:$0xf0]  ;;  %v1644_v5 = vpop.f32.mrf.mxu3  ;;  %v2991_v25 = vor.u32 %v3299_v18, %v2990_v17 }
  0xdc   :  { %v3126_v28 = vld [vmem:[#allocation5 + $0x214] sm:$0xf]  ;;  %v2059_v43 = vor.u32 %v3062_v23, %v2056_v24  ;;  %v2255_v4 = vor.u32 %v3115_v58, %v2254_v57  ;;  %v3099_v23 = vld [vmem:[#allocation5 + $0x134] sm:$0xf0] }
  0xdd   :  { %1896 = vmatpush.bf16.msrb.mxu3 %v2955_v52  ;;  %1871 = vmatpush.bf16.msrb.mxu1 %v2411_v59  ;;  %v2312_v29 = vld [vmem:[#allocation5 + $0x230] sm:$0xf0]  ;;  %v1618_v52 = vpop.f32.mrf.mxu1  ;;  %v2510_v59 = vld [vmem:[#allocation5 + $0x398] sm:$0xf] }
  0xde   :  { %v3190_v32 = vld [vmem:[#allocation5 + $0x414] sm:$0xf]  ;;  %v2315_v48 = vor.u32 %v3126_v28, %v2312_v29  ;;  %v2446_v24 = vld [vmem:[#allocation5 + $0x318] sm:$0xf] }
  0xdf   :  { %1884 = vmatpush.bf16.msrb.mxu2 %v2667_v60  ;;  %1859 = vmatpush.bf16.msrb.mxu0 %v2123_v6  ;;  %v2568_v35 = vld [vmem:[#allocation5 + $0x430] sm:$0xf0]  ;;  %v1605_v60 = vpop.f32.mrf.mxu0  ;;  %v2511_v6 = vor.u32 %v3179_v62, %v2510_v59  ;;  %v3227_v28 = vld [vmem:[#allocation5 + $0x534] sm:$0xf0] }
  0xe0   :  { %v3254_v36 = vld [vmem:[#allocation5 + $0x614] sm:$0xf]  ;;  %v2571_v49 = vor.u32 %v3190_v32, %v2568_v35  ;;  %v2958_v29 = vld [vmem:[#allocation5 + $0x718] sm:$0xf] }
  0xe1   :  { %1897 = vmatpush.bf16.msrb.mxu3 %v2923_v0  ;;  %1872 = vmatpush.bf16.msrb.mxu1 %v2379_v7  ;;  %v2824_v37 = vld [vmem:[#allocation5 + $0x630] sm:$0xf0]  ;;  %v3243_v0 = vld [vmem:[#allocation5 + $0x5b4] sm:$0xf0] }
  0xe2   :  { %v2827_v53 = vor.u32 %v3254_v36, %v2824_v37  ;;  %v2767_v7 = vor.u32 %v3243_v0, %v2766_v63  ;;  %v3291_v32 = vld [vmem:[#allocation5 + $0x734] sm:$0xf0] }
  0xe3   :  { %1885 = vmatpush.bf16.msrb.mxu2 %v2635_v8  ;;  %1860 = vmatpush.bf16.msrb.mxu0 %v2091_v22  ;;  %v2222_v8 = vld [vmem:[#allocation5 + $0x158] sm:$0xf]  ;;  %v2959_v41 = vor.u32 %v3291_v32, %v2958_v29  ;;  %v3119_v32 = vld [vmem:[#allocation5 + $0x1dc] sm:$0xf] }
  0xe4   :  { %v2223_v19 = vor.u32 %v3107_v9, %v2222_v8  ;;  %v2190_v22 = vld [vmem:[#allocation5 + $0x118] sm:$0xf] }
  0xe5   :  { %1898 = vmatpush.bf16.msrb.mxu3 %v2891_v13  ;;  %1873 = vmatpush.bf16.msrb.mxu1 %v2347_v26  ;;  %v2734_v13 = vld [vmem:[#allocation5 + $0x558] sm:$0xf]  ;;  %v2191_v33 = vor.u32 %v3099_v23, %v2190_v22 }
  0xe6   :  { %v2735_v21 = vor.u32 %v3235_v14, %v2734_v13  ;;  %v3163_v26 = vld [vmem:[#allocation5 + $0x334] sm:$0xf0] }
  0xe7   :  { %1886 = vmatpush.bf16.msrb.mxu2 %v2603_v27  ;;  %1861 = vmatpush.bf16.msrb.mxu0 %v2059_v43  ;;  %v2702_v27 = vld [vmem:[#allocation5 + $0x518] sm:$0xf]  ;;  %v2447_v35 = vor.u32 %v3163_v26, %v2446_v24 }
  0xe8   :  { %v2703_v36 = vor.u32 %v3227_v28, %v2702_v27  ;;  %v2158_v37 = vld [vmem:[#allocation5 + $0xd8] sm:$0xf] }
  0xe9   :  { %1899 = vmatpush.bf16.msrb.mxu3 %v2859_v34  ;;  %1874 = vmatpush.bf16.msrb.mxu1 %v2315_v48  ;;  %v1655_v34 = vpop.f32.mrf.mxu0  ;;  %v3091_v38 = vld [vmem:[#allocation5 + $0xf4] sm:$0xf0]  ;;  %v1668_v40 = vpop.f32.mrf.mxu1 }
  0xea   :  { %1862 = vmatmul.bf16.vlgmr.msrb.gmra.mxu0 %v3430_v30  ;;  %v2414_v39 = vld [vmem:[#allocation5 + $0x2d8] sm:$0xf]  ;;  %v1669_v45 = vadd.f32 %v1668_v40, %v1655_v34  ;;  %v2159_v48 = vor.u32 %v3091_v38, %v2158_v37  ;;  %v3183_v34 = vld [vmem:[#allocation5 + $0x3dc] sm:$0xf] }
  0xeb   :  { %1887 = vmatpush.bf16.msrb.mxu2 %v2571_v49  ;;  %1906 = vmatpush.bf16.msra.mxu0 %v2287_v54  ;;  %v2670_v43 = vld [vmem:[#allocation5 + $0x4d8] sm:$0xf]  ;;  %v2415_v49 = vor.u32 %v3155_v42, %v2414_v39  ;;  %v3247_v37 = vld [vmem:[#allocation5 + $0x5dc] sm:$0xf] }
  0xec   :  { %1875 = vmatmul.bf16.vlgmr.msrb.gmra.mxu1 %v3432_v31  ;;  %v2926_v46 = vld [vmem:[#allocation5 + $0x6d8] sm:$0xf]  ;;  %v2671_v50 = vor.u32 %v3219_v44, %v2670_v43  ;;  %v2800_v38 = vld [vmem:[#allocation5 + $0x5f8] sm:$0xf0] }
  0xed   :  { %1900 = vmatpush.bf16.msrb.mxu3 %v2827_v53  ;;  %1919 = vmatpush.bf16.msra.mxu1 %v2543_v55  ;;  %v3283_v47 = vld [vmem:[#allocation5 + $0x6f4] sm:$0xf0]  ;;  %v3056_v42 = vld [vmem:[#allocation5 + $0x7f8] sm:$0xf0] }
  0xee   :  { %1888 = vmatmul.bf16.vlgmr.msrb.gmra.mxu2 %v3425_v15  ;;  %v3083_v52 = vld [vmem:[#allocation5 + $0xb4] sm:$0xf0]  ;;  %v2927_v55 = vor.u32 %v3283_v47, %v2926_v46  ;;  %v2803_v46 = vor.u32 %v3247_v37, %v2800_v38  ;;  %v3111_v47 = vld [vmem:[#allocation5 + $0x19c] sm:$0xf] }
  0xef   :  { %1932 = vmatpush.bf16.msra.mxu2 %v2799_v56  ;;  %1907 = vmatpush.bf16.msra.mxu0 %v2255_v4  ;;  %v2382_v53 = vld [vmem:[#allocation5 + $0x298] sm:$0xf]  ;;  %v2127_v63 = vor.u32 %v3083_v52, %v2126_v51  ;;  %v2512_v51 = vld [vmem:[#allocation5 + $0x3b8] sm:$0xf0] }
  0xf0   :  { %1901 = vmatmul.bf16.vlgmr.msrb.gmra.mxu3 %v3427_v16  ;;  %v3147_v56 = vld [vmem:[#allocation5 + $0x2b4] sm:$0xf0]  ;;  %v3239_v52 = vld [vmem:[#allocation5 + $0x59c] sm:$0xf] }
  0xf1   :  { %1945 = vmatpush.bf16.msra.mxu3 %v3055_v61  ;;  %1920 = vmatpush.bf16.msra.mxu1 %v2511_v6  ;;  %v1681_v54 = vpop.f32.mrf.mxu2  ;;  %v2638_v57 = vld [vmem:[#allocation5 + $0x498] sm:$0xf]  ;;  %v1657_v2 = vpop.f32.mrf.mxu0  ;;  %v2383_v3 = vor.u32 %v3147_v56, %v2382_v53  ;;  %v2768_v53 = vld [vmem:[#allocation5 + $0x5b8] sm:$0xf0] }
  0xf2   :  { %v3211_v58 = vld [vmem:[#allocation5 + $0x4b4] sm:$0xf0]  ;;  %v1682_v59 = vadd.f32 %v1681_v54, %v1669_v45  ;;  %v1670_v8 = vpop.f32.mrf.mxu1  ;;  %v3303_v54 = vld [vmem:[#allocation5 + $0x79c] sm:$0xf] }
  0xf3   :  { %1933 = vmatpush.bf16.msra.mxu2 %v2767_v7  ;;  %1908 = vmatpush.bf16.msra.mxu0 %v2223_v19  ;;  %v1694_v60 = vpop.f32.mrf.mxu3  ;;  %v2894_v61 = vld [vmem:[#allocation5 + $0x698] sm:$0xf]  ;;  %v2639_v4 = vor.u32 %v3211_v58, %v2638_v57  ;;  %v2771_v58 = vor.u32 %v3239_v52, %v2768_v53  ;;  %v3295_v2 = vld [vmem:[#allocation5 + $0x75c] sm:$0xf] }
  0xf4   :  { %v3275_v62 = vld [vmem:[#allocation5 + $0x6b4] sm:$0xf0]  ;;  %v1695_v1 = vadd.f32 %v1694_v60, %v1682_v59  ;;  %v3103_v59 = vld [vmem:[#allocation5 + $0x15c] sm:$0xf] }
  0xf5   :  { %1946 = vmatpush.bf16.msra.mxu3 %v3023_v11  ;;  %1921 = vmatpush.bf16.msra.mxu1 %v2479_v20  ;;  %v2094_v0 = vld [vmem:[#allocation5 + $0x58] sm:$0xf]  ;;  %v2895_v9 = vor.u32 %v3275_v62, %v2894_v61  ;;  %v2224_v60 = vld [vmem:[#allocation5 + $0x178] sm:$0xf0] }
  0xf6   :  { %v3075_v5 = vld [vmem:[#allocation5 + $0x74] sm:$0xf0]  ;;  %2011 = vst [vmem:[#allocation7 + $0x8] sm:$0xff] %v1695_v1  ;;  %v3167_v61 = vld [vmem:[#allocation5 + $0x35c] sm:$0xf] }
  0xf7   :  { %1934 = vmatpush.bf16.msra.mxu2 %v2735_v21  ;;  %1909 = vmatpush.bf16.msra.mxu0 %v2191_v33  ;;  %v2350_v6 = vld [vmem:[#allocation5 + $0x258] sm:$0xf]  ;;  %v2095_v14 = vor.u32 %v3075_v5, %v2094_v0  ;;  %v2288_v33 = vld [vmem:[#allocation5 + $0x1f8] sm:$0xf0] }
  0xf8   :  { %v3139_v7 = vld [vmem:[#allocation5 + $0x274] sm:$0xf0]  ;;  %v2291_v44 = vor.u32 %v3119_v32, %v2288_v33  ;;  %v3231_v0 = vld [vmem:[#allocation5 + $0x55c] sm:$0xf] }
  0xf9   :  { %1947 = vmatpush.bf16.msra.mxu3 %v2991_v25  ;;  %1922 = vmatpush.bf16.msra.mxu1 %v2447_v35  ;;  %v2606_v10 = vld [vmem:[#allocation5 + $0x458] sm:$0xf]  ;;  %v2351_v19 = vor.u32 %v3139_v7, %v2350_v6  ;;  %v1683_v24 = vpop.f32.mrf.mxu2  ;;  %v2736_v1 = vld [vmem:[#allocation5 + $0x578] sm:$0xf0] }
  0xfa   :  { %v3203_v11 = vld [vmem:[#allocation5 + $0x474] sm:$0xf0]  ;;  %v2739_v6 = vor.u32 %v3231_v0, %v2736_v1  ;;  %v3095_v7 = vld [vmem:[#allocation5 + $0x11c] sm:$0xf] }
  0xfb   :  { %1935 = vmatpush.bf16.msra.mxu2 %v2703_v36  ;;  %1910 = vmatpush.bf16.msra.mxu0 %v2159_v48  ;;  %v2862_v12 = vld [vmem:[#allocation5 + $0x658] sm:$0xf]  ;;  %v2607_v20 = vor.u32 %v3203_v11, %v2606_v10  ;;  %v1696_v29 = vpop.f32.mrf.mxu3  ;;  %v2544_v36 = vld [vmem:[#allocation5 + $0x3f8] sm:$0xf0] }
  0xfc   :  { %v3267_v13 = vld [vmem:[#allocation5 + $0x674] sm:$0xf0]  ;;  %v2547_v45 = vor.u32 %v3183_v34, %v2544_v36  ;;  %v2256_v48 = vld [vmem:[#allocation5 + $0x1b8] sm:$0xf0] }
  0xfd   :  { %1948 = vmatpush.bf16.msra.mxu3 %v2959_v41  ;;  %1923 = vmatpush.bf16.msra.mxu1 %v2415_v49  ;;  %v2062_v17 = vld [vmem:[#allocation5 + $0x18] sm:$0xf]  ;;  %v2863_v25 = vor.u32 %v3267_v13, %v2862_v12  ;;  %v3311_v41 = vld [vmem:[#allocation5 + $0x7dc] sm:$0xf]  ;;  %v2259_v56 = vor.u32 %v3111_v47, %v2256_v48 }
  0xfe   :  { %v3067_v18 = vld [vmem:[#allocation5 + $0x34] sm:$0xf0]  ;;  %v3175_v49 = vld [vmem:[#allocation5 + $0x39c] sm:$0xf] }
  0xff   :  { %1936 = vmatpush.bf16.msra.mxu2 %v2671_v50  ;;  %1911 = vmatpush.bf16.msra.mxu0 %v2127_v63  ;;  %v2318_v21 = vld [vmem:[#allocation5 + $0x218] sm:$0xf]  ;;  %v2063_v35 = vor.u32 %v3067_v18, %v2062_v17  ;;  %v3059_v50 = vor.u32 %v3311_v41, %v3056_v42  ;;  %v2515_v57 = vor.u32 %v3175_v49, %v2512_v51  ;;  %v2480_v63 = vld [vmem:[#allocation5 + $0x378] sm:$0xf0] }
 0x100   :  { %v3131_v22 = vld [vmem:[#allocation5 + $0x234] sm:$0xf0]  ;;  %v2483_v5 = vor.u32 %v3167_v61, %v2480_v63  ;;  %v2192_v8 = vld [vmem:[#allocation5 + $0x138] sm:$0xf0] }
 0x101   :  { %1949 = vmatpush.bf16.msra.mxu3 %v2927_v55  ;;  %1924 = vmatpush.bf16.msra.mxu1 %v2383_v3  ;;  %v2574_v23 = vld [vmem:[#allocation5 + $0x418] sm:$0xf]  ;;  %v2319_v39 = vor.u32 %v3131_v22, %v2318_v21  ;;  %v3024_v55 = vld [vmem:[#allocation5 + $0x7b8] sm:$0xf0]  ;;  %v2195_v18 = vor.u32 %v3095_v7, %v2192_v8 }
 0x102   :  { %v3195_v26 = vld [vmem:[#allocation5 + $0x434] sm:$0xf0]  ;;  %v3027_v62 = vor.u32 %v3303_v54, %v3024_v55  ;;  %v2992_v3 = vld [vmem:[#allocation5 + $0x778] sm:$0xf0] }
 0x103   :  { %1937 = vmatpush.bf16.msra.mxu2 %v2639_v4  ;;  %v2830_v27 = vld [vmem:[#allocation5 + $0x618] sm:$0xf]  ;;  %1912 = vmatpush.bf16.msra.mxu0 %v2095_v14  ;;  %v2575_v40 = vor.u32 %v3195_v26, %v2574_v23  ;;  %v2227_v4 = vor.u32 %v3103_v59, %v2224_v60  ;;  %v2995_v10 = vor.u32 %v3295_v2, %v2992_v3  ;;  %v2448_v11 = vld [vmem:[#allocation5 + $0x338] sm:$0xf0] }
 0x104   :  { %v3259_v28 = vld [vmem:[#allocation5 + $0x634] sm:$0xf0]  ;;  %v3223_v12 = vld [vmem:[#allocation5 + $0x51c] sm:$0xf] }
 0x105   :  { %1950 = vmatpush.bf16.msra.mxu3 %v2895_v9  ;;  %1925 = vmatpush.bf16.msra.mxu1 %v2351_v19  ;;  %v2831_v43 = vor.u32 %v3259_v28, %v2830_v27  ;;  %v3159_v9 = vld [vmem:[#allocation5 + $0x31c] sm:$0xf] }
 0x106   :  { %v2704_v13 = vld [vmem:[#allocation5 + $0x538] sm:$0xf0] }
 0x107   :  { %1938 = vmatpush.bf16.msra.mxu2 %v2607_v20  ;;  %1913 = vmatpush.bf16.msra.mxu0 %v2063_v35  ;;  %v3287_v14 = vld [vmem:[#allocation5 + $0x71c] sm:$0xf]  ;;  %v1707_v19 = vpop.f32.mrf.mxu0  ;;  %v2451_v20 = vor.u32 %v3159_v9, %v2448_v11  ;;  %v2707_v21 = vor.u32 %v3223_v12, %v2704_v13 }
 0x108   :  { %v2960_v17 = vld [vmem:[#allocation5 + $0x738] sm:$0xf0] }
 0x109   :  { %1951 = vmatpush.bf16.msra.mxu3 %v2863_v25  ;;  %1926 = vmatpush.bf16.msra.mxu1 %v2319_v39  ;;  %v3087_v22 = vld [vmem:[#allocation5 + $0xdc] sm:$0xf]  ;;  %v1720_v25 = vpop.f32.mrf.mxu1  ;;  %v2963_v26 = vor.u32 %v3287_v14, %v2960_v17 }
 0x10a   :  { %1914 = vmatmul.bf16.vlgmr.msra.gmra.mxu0 %v3430_v30  ;;  %v2160_v23 = vld [vmem:[#allocation5 + $0xf8] sm:$0xf0]  ;;  %v1721_v32 = vadd.f32 %v1720_v25, %v1707_v19 }
 0x10b   :  { %1939 = vmatpush.bf16.msra.mxu2 %v2575_v40  ;;  %1958 = vmatpush.bf16.msrb.mxu0 %v2291_v44  ;;  %v3151_v24 = vld [vmem:[#allocation5 + $0x2dc] sm:$0xf]  ;;  %v2163_v35 = vor.u32 %v3087_v22, %v2160_v23 }
 0x10c   :  { %1927 = vmatmul.bf16.vlgmr.msra.gmra.mxu1 %v3432_v31  ;;  %v2416_v27 = vld [vmem:[#allocation5 + $0x2f8] sm:$0xf0] }
 0x10d   :  { %1952 = vmatpush.bf16.msra.mxu3 %v2831_v43  ;;  %1971 = vmatpush.bf16.msrb.mxu1 %v2547_v45  ;;  %v3215_v28 = vld [vmem:[#allocation5 + $0x4dc] sm:$0xf]  ;;  %v2419_v36 = vor.u32 %v3151_v24, %v2416_v27 }
 0x10e   :  { %1940 = vmatmul.bf16.vlgmr.msra.gmra.mxu2 %v3425_v15  ;;  %v2672_v29 = vld [vmem:[#allocation5 + $0x4f8] sm:$0xf0] }
 0x10f   :  { %1984 = vmatpush.bf16.msrb.mxu2 %v2803_v46  ;;  %1959 = vmatpush.bf16.msrb.mxu0 %v2259_v56  ;;  %v3279_v33 = vld [vmem:[#allocation5 + $0x6dc] sm:$0xf]  ;;  %v2675_v37 = vor.u32 %v3215_v28, %v2672_v29  ;;  %v1709_v53 = vpop.f32.mrf.mxu0 }
 0x110   :  { %1953 = vmatmul.bf16.vlgmr.msra.gmra.mxu3 %v3427_v16  ;;  %v2928_v34 = vld [vmem:[#allocation5 + $0x6f8] sm:$0xf0] }
 0x111   :  { %1997 = vmatpush.bf16.msrb.mxu3 %v3059_v50  ;;  %1972 = vmatpush.bf16.msrb.mxu1 %v2515_v57  ;;  %v3079_v38 = vld [vmem:[#allocation5 + $0x9c] sm:$0xf]  ;;  %v1733_v41 = vpop.f32.mrf.mxu2  ;;  %v2931_v42 = vor.u32 %v3279_v33, %v2928_v34  ;;  %v1722_v59 = vpop.f32.mrf.mxu1 }
 0x112   :  { %v2128_v39 = vld [vmem:[#allocation5 + $0xb8] sm:$0xf0]  ;;  %v1734_v46 = vadd.f32 %v1733_v41, %v1721_v32 }
 0x113   :  { %1985 = vmatpush.bf16.msrb.mxu2 %v2771_v58  ;;  %1960 = vmatpush.bf16.msrb.mxu0 %v2227_v4  ;;  %v3143_v40 = vld [vmem:[#allocation5 + $0x29c] sm:$0xf]  ;;  %v1746_v47 = vpop.f32.mrf.mxu3  ;;  %v2131_v50 = vor.u32 %v3079_v38, %v2128_v39 }
 0x114   :  { %v2384_v43 = vld [vmem:[#allocation5 + $0x2b8] sm:$0xf0]  ;;  %v1747_v52 = vadd.f32 %v1746_v47, %v1734_v46 }
 0x115   :  { %1998 = vmatpush.bf16.msrb.mxu3 %v3027_v62  ;;  %1973 = vmatpush.bf16.msrb.mxu1 %v2483_v5  ;;  %v3207_v44 = vld [vmem:[#allocation5 + $0x49c] sm:$0xf]  ;;  %v2387_v54 = vor.u32 %v3143_v40, %v2384_v43 }
 0x116   :  { %v2640_v45 = vld [vmem:[#allocation5 + $0x4b8] sm:$0xf0]  ;;  %2012 = vst [vmem:[#allocation7 + $0x10] sm:$0xff] %v1747_v52 }
 0x117   :  { %1986 = vmatpush.bf16.msrb.mxu2 %v2739_v6  ;;  %1961 = vmatpush.bf16.msrb.mxu0 %v2195_v18  ;;  %v3271_v48 = vld [vmem:[#allocation5 + $0x69c] sm:$0xf]  ;;  %v2643_v55 = vor.u32 %v3207_v44, %v2640_v45 }
 0x118   :  { %v2896_v49 = vld [vmem:[#allocation5 + $0x6b8] sm:$0xf0] }
 0x119   :  { %1999 = vmatpush.bf16.msrb.mxu3 %v2995_v10  ;;  %1974 = vmatpush.bf16.msrb.mxu1 %v2451_v20  ;;  %v3071_v51 = vld [vmem:[#allocation5 + $0x5c] sm:$0xf]  ;;  %v2899_v60 = vor.u32 %v3271_v48, %v2896_v49  ;;  %v1735_v7 = vpop.f32.mrf.mxu2 }
 0x11a   :  { %v2096_v56 = vld [vmem:[#allocation5 + $0x78] sm:$0xf0] }
 0x11b   :  { %1987 = vmatpush.bf16.msrb.mxu2 %v2707_v21  ;;  %1962 = vmatpush.bf16.msrb.mxu0 %v2163_v35  ;;  %v3135_v57 = vld [vmem:[#allocation5 + $0x25c] sm:$0xf]  ;;  %v2099_v1 = vor.u32 %v3071_v51, %v2096_v56  ;;  %v1748_v12 = vpop.f32.mrf.mxu3 }
 0x11c   :  { %v2352_v58 = vld [vmem:[#allocation5 + $0x278] sm:$0xf0] }
 0x11d   :  { %2000 = vmatpush.bf16.msrb.mxu3 %v2963_v26  ;;  %1975 = vmatpush.bf16.msrb.mxu1 %v2419_v36  ;;  %v3199_v61 = vld [vmem:[#allocation5 + $0x45c] sm:$0xf]  ;;  %v2355_v2 = vor.u32 %v3135_v57, %v2352_v58 }
 0x11e   :  { %v2608_v62 = vld [vmem:[#allocation5 + $0x478] sm:$0xf0] }
 0x11f   :  { %1988 = vmatpush.bf16.msrb.mxu2 %v2675_v37  ;;  %v3263_v63 = vld [vmem:[#allocation5 + $0x65c] sm:$0xf]  ;;  %1963 = vmatpush.bf16.msrb.mxu0 %v2131_v50  ;;  %v2611_v3 = vor.u32 %v3199_v61, %v2608_v62 }
 0x120   :  { %v2864_v0 = vld [vmem:[#allocation5 + $0x678] sm:$0xf0] }
 0x121   :  { %2001 = vmatpush.bf16.msrb.mxu3 %v2931_v42  ;;  %1976 = vmatpush.bf16.msrb.mxu1 %v2387_v54  ;;  %v3063_v4 = vld [vmem:[#allocation5 + $0x1c] sm:$0xf]  ;;  %v2867_v8 = vor.u32 %v3263_v63, %v2864_v0 }
 0x122   :  { %v2064_v5 = vld [vmem:[#allocation5 + $0x38] sm:$0xf0] }
 0x123   :  { %1989 = vmatpush.bf16.msrb.mxu2 %v2643_v55  ;;  %v3127_v6 = vld [vmem:[#allocation5 + $0x21c] sm:$0xf]  ;;  %1964 = vmatpush.bf16.msrb.mxu0 %v2099_v1  ;;  %v2067_v17 = vor.u32 %v3063_v4, %v2064_v5 }
 0x124   :  { %v2320_v9 = vld [vmem:[#allocation5 + $0x238] sm:$0xf0] }
 0x125   :  { %2002 = vmatpush.bf16.msrb.mxu3 %v2899_v60  ;;  %v3191_v10 = vld [vmem:[#allocation5 + $0x41c] sm:$0xf]  ;;  %1977 = vmatpush.bf16.msrb.mxu1 %v2355_v2  ;;  %v2323_v18 = vor.u32 %v3127_v6, %v2320_v9 }
 0x126   :  { %v2576_v11 = vld [vmem:[#allocation5 + $0x438] sm:$0xf0] }
 0x127   :  { %v3255_v13 = vld [vmem:[#allocation5 + $0x61c] sm:$0xf]  ;;  %1990 = vmatpush.bf16.msrb.mxu2 %v2611_v3  ;;  %v2579_v19 = vor.u32 %v3191_v10, %v2576_v11  ;;  %1965 = vmatpush.bf16.msrb.mxu0 %v2067_v17  ;;  %v1759_v21 = vpop.f32.mrf.mxu0 }
 0x128   :  { %v2832_v14 = vld [vmem:[#allocation5 + $0x638] sm:$0xf0] }
 0x129   :  { %2003 = vmatpush.bf16.msrb.mxu3 %v2867_v8  ;;  %v2835_v20 = vor.u32 %v3255_v13, %v2832_v14  ;;  %1978 = vmatpush.bf16.msrb.mxu1 %v2323_v18  ;;  %v1772_v22 = vpop.f32.mrf.mxu1 }
 0x12a   :  { %1966 = vmatmul.bf16.vlgmr.msrb.gmra.mxu0 %v3430_v30  ;;  %v1773_v23 = vadd.f32 %v1772_v22, %v1759_v21 }
 0x12b   :  { %1991 = vmatpush.bf16.msrb.mxu2 %v2579_v19 }
 0x12c   :  { %1979 = vmatmul.bf16.vlgmr.msrb.gmra.mxu1 %v3432_v31 }
 0x12d   :  { %2004 = vmatpush.bf16.msrb.mxu3 %v2835_v20 }
 0x12e   :  { %1992 = vmatmul.bf16.vlgmr.msrb.gmra.mxu2 %v3425_v15 }
 0x12f   :  { %v1761_v28 = vpop.f32.mrf.mxu0 }
 0x130   :  { %2005 = vmatmul.bf16.vlgmr.msrb.gmra.mxu3 %v3427_v16 }
 0x131   :  { %v1785_v24 = vpop.f32.mrf.mxu2  ;;  %v1774_v29 = vpop.f32.mrf.mxu1 }
 0x132   :  { %v1786_v25 = vadd.f32 %v1785_v24, %v1773_v23 }
 0x133   :  { %v1798_v26 = vpop.f32.mrf.mxu3 }
 0x134   :  { %v1799_v27 = vadd.f32 %v1798_v26, %v1786_v25 }
 0x136   :  { %2013 = vst [vmem:[#allocation7 + $0x18] sm:$0xff] %v1799_v27 }
 0x139   :  { %v1787_v32 = vpop.f32.mrf.mxu2 }
 0x13b   :  { %v1800_v33 = vpop.f32.mrf.mxu3 }
 0x147   :  { %v1811_v34 = vpop.f32.mrf.mxu0 }
 0x149   :  { %v1824_v30 = vpop.f32.mrf.mxu1 }
 0x14a   :  { %v1825_v35 = vadd.f32 %v1824_v30, %v1811_v34 }
 0x14f   :  { %v1813_v16 = vpop.f32.mrf.mxu0 }
 0x151   :  { %v1837_v31 = vpop.f32.mrf.mxu2  ;;  %v1826_v38 = vpop.f32.mrf.mxu1 }
 0x152   :  { %v1838_v36 = vadd.f32 %v1837_v31, %v1825_v35 }
 0x153   :  { %v1850_v15 = vpop.f32.mrf.mxu3 }
 0x154   :  { %v1851_v37 = vadd.f32 %v1850_v15, %v1838_v36 }
 0x156   :  { %2014 = vst [vmem:[#allocation7 + $0x20] sm:$0xff] %v1851_v37 }
 0x159   :  { %v1839_v39 = vpop.f32.mrf.mxu2 }
 0x15b   :  { %v1852_v40 = vpop.f32.mrf.mxu3 }
 0x167   :  { %v1863_v41 = vpop.f32.mrf.mxu0 }
 0x169   :  { %v1876_v42 = vpop.f32.mrf.mxu1 }
 0x16a   :  { %v1877_v43 = vadd.f32 %v1876_v42, %v1863_v41 }
 0x16f   :  { %v1865_v48 = vpop.f32.mrf.mxu0 }
 0x171   :  { %v1889_v44 = vpop.f32.mrf.mxu2  ;;  %v1878_v49 = vpop.f32.mrf.mxu1 }
 0x172   :  { %v1890_v45 = vadd.f32 %v1889_v44, %v1877_v43 }
 0x173   :  { %v1902_v46 = vpop.f32.mrf.mxu3 }
 0x174   :  { %v1903_v47 = vadd.f32 %v1902_v46, %v1890_v45 }
 0x176   :  { %2015 = vst [vmem:[#allocation7 + $0x28] sm:$0xff] %v1903_v47 }
 0x179   :  { %v1891_v50 = vpop.f32.mrf.mxu2 }
 0x17b   :  { %v1904_v51 = vpop.f32.mrf.mxu3 }
 0x187   :  { %v1915_v52 = vpop.f32.mrf.mxu0 }
 0x189   :  { %v1928_v53 = vpop.f32.mrf.mxu1 }
 0x18a   :  { %v1929_v54 = vadd.f32 %v1928_v53, %v1915_v52 }
 0x18f   :  { %v1917_v59 = vpop.f32.mrf.mxu0 }
 0x191   :  { %v1941_v55 = vpop.f32.mrf.mxu2  ;;  %v1930_v60 = vpop.f32.mrf.mxu1 }
 0x192   :  { %v1942_v56 = vadd.f32 %v1941_v55, %v1929_v54 }
 0x193   :  { %v1954_v57 = vpop.f32.mrf.mxu3 }
 0x194   :  { %v1955_v58 = vadd.f32 %v1954_v57, %v1942_v56 }
 0x196   :  { %2016 = vst [vmem:[#allocation7 + $0x30] sm:$0xff] %v1955_v58 }
 0x199   :  { %v1943_v61 = vpop.f32.mrf.mxu2 }
 0x19b   :  { %v1956_v62 = vpop.f32.mrf.mxu3 }
 0x1a7   :  { %v1967_v63 = vpop.f32.mrf.mxu0 }
 0x1a9   :  { %v1980_v0 = vpop.f32.mrf.mxu1 }
 0x1aa   :  { %v1981_v1 = vadd.f32 %v1980_v0, %v1967_v63 }
 0x1af   :  { %v1969_v5 = vpop.f32.mrf.mxu0 }
 0x1b1   :  { %v1993_v2 = vpop.f32.mrf.mxu2  ;;  %v1982_v6 = vpop.f32.mrf.mxu1 }
 0x1b2   :  { %v1994_v3 = vadd.f32 %v1993_v2, %v1981_v1 }
 0x1b3   :  { %v2006_v4 = vpop.f32.mrf.mxu3 }
 0x1b4   :  { %v2007_v7 = vadd.f32 %v2006_v4, %v1994_v3 }
 0x1b6   :  { %2017 = vst [vmem:[#allocation7 + $0x38] sm:$0xff] %v2007_v7 }
 0x1b7   :  { %2028 = dma.vmem_to_hbm [thread:$0]  %s2024_s1, 1024, %s2026_s23, [#allocation4]  }
 0x1b9   :  { %v1995_v8 = vpop.f32.mrf.mxu2 }
 0x1bb   :  { %v2008_v9 = vpop.f32.mrf.mxu3 }
 0x1bc   :  { %3397 = dma.done.wait [#allocation4], 1024  }
 0x1bd   :  { %3398 = vsyncadd [#allocation4], 4294966272 }
 0x1be   :  { %2033 = vsyncpa [#allocation3], 1 }
 0x1bf   :  { %2034 = vsyncpa [#allocation6], 1 }
 0x1c0   :  { %2035 = vsyncpa [#allocation4], 1 }

</bundles_post_ra>
